<compile_context>
chip_gen: v7x
topology: tpu7x:2x2x1
jax: 0.10.0
libtpu: 0.0.40
codegen_flags: <defaults>
</compile_context>

<pallas_src>
import functools

import jax
import jax.numpy as jnp
from jax.experimental import pallas as pl
from jax.experimental.pallas import tpu as pltpu


def _round_up(x, m):
    return (x + m - 1) // m * m


# ----------------------------------------------------------------------------
# Fused double_conv kernel: (conv3x3 -> BN -> ReLU) * 2 in one pallas_call.
#
# Per-sample activation layout is (C, H*W): channels on sublanes, flat spatial
# on lanes.  Channel counts are padded to a multiple of 8 with zero weights /
# zero gamma so padded channels stay exactly zero through both blocks.
#
# Grid = (3 stages, N), both axes "arbitrary" (sequential):
#   stage 0: y1[n] = conv1(x[n]) + b1 -> VMEM, accumulate BN1 moments;
#            at n == N-1 fold moments into (scale1, shift1) in VMEM.
#   stage 1: z = relu(y1[n]*scale1 + shift1); y2[n] = conv2(z) + b2 -> VMEM,
#            accumulate BN2 moments; fold into (scale2, shift2).
#   stage 2: out[n] = relu(y2[n]*scale2 + shift2).
# ----------------------------------------------------------------------------
def _double_conv_kernel(x_ref, w1_ref, b1_ref, g1_ref, be1_ref,
                        w2_ref, b2_ref, g2_ref, be2_ref,
                        out_ref,
                        y1buf, y2buf, m1, m2,
                        *, width, inv_cnt, eps):
    s = pl.program_id(0)
    n = pl.program_id(1)
    last_n = pl.num_programs(1) - 1
    hw = out_ref.shape[2]

    def conv3x3(z, w_ref, b_ref):
        """One im2col matmul: (Cout, 9*C) @ (9*C, HW) on the MXU."""
        c = z.shape[0]
        zeros = jnp.zeros((c, width + 1), z.dtype)
        zp = jnp.concatenate([zeros, z, zeros], axis=1)        # (C, HW+2W+2)
        col = jax.lax.broadcasted_iota(jnp.int32, (1, hw), 1) % width
        taps = []
        for dy in (-1, 0, 1):
            for dx in (-1, 0, 1):
                start = (width + 1) + dy * width + dx          # static offset
                t = zp[:, start:start + hw]                    # shifted image
                if dx == -1:                                   # mask j-1 wrap
                    t = jnp.where(col >= 1, t, 0.0)
                elif dx == 1:                                  # mask j+1 wrap
                    t = jnp.where(col < width - 1, t, 0.0)
                taps.append(t)
        patch = jnp.concatenate(taps, axis=0)                  # (9*C, HW)
        return jnp.dot(w_ref[...], patch,
                       preferred_element_type=jnp.float32) + b_ref[...]

    # ---- stage 0: conv1 + BN1 moment accumulation ---------------------------
    @pl.when(s == 0)
    def _stage0():
        @pl.when(n == 0)
        def _():
            m1[...] = jnp.zeros_like(m1)

        y1 = conv3x3(x_ref[0], w1_ref, b1_ref)                 # (Cop, HW)
        y1buf[n] = y1
        m1[0] += jnp.sum(y1, axis=1, keepdims=True)
        m1[1] += jnp.sum(y1 * y1, axis=1, keepdims=True)
        out_ref[0] = y1     # keep the output buffer defined; overwritten later

        @pl.when(n == last_n)
        def _():
            mean = m1[0] * inv_cnt
            var = jnp.maximum(m1[1] * inv_cnt - mean * mean, 0.0)
            scale = g1_ref[...] * jax.lax.rsqrt(var + eps)
            m1[0] = scale
            m1[1] = be1_ref[...] - mean * scale

    # ---- stage 1: BN1 + ReLU -> conv2 + BN2 moments -------------------------
    @pl.when(s == 1)
    def _stage1():
        @pl.when(n == 0)
        def _():
            m2[...] = jnp.zeros_like(m2)

        z = jnp.maximum(y1buf[n] * m1[0] + m1[1], 0.0)
        y2 = conv3x3(z, w2_ref, b2_ref)
        y2buf[n] = y2
        m2[0] += jnp.sum(y2, axis=1, keepdims=True)
        m2[1] += jnp.sum(y2 * y2, axis=1, keepdims=True)
        out_ref[0] = y2

        @pl.when(n == last_n)
        def _():
            mean = m2[0] * inv_cnt
            var = jnp.maximum(m2[1] * inv_cnt - mean * mean, 0.0)
            scale = g2_ref[...] * jax.lax.rsqrt(var + eps)
            m2[0] = scale
            m2[1] = be2_ref[...] - mean * scale

    # ---- stage 2: BN2 + ReLU -> final output --------------------------------
    @pl.when(s == 2)
    def _stage2():
        out_ref[0] = jnp.maximum(y2buf[n] * m2[0] + m2[1], 0.0)


# ----------------------------------------------------------------------------
# Wrapper: parameter packing + pallas_call
# ----------------------------------------------------------------------------
def _pack_conv_weight(w_hwio, cin_p, cout_p):
    """(3,3,Cin,Cout) HWIO -> (Cout_p, 9*Cin_p), tap-major, zero-padded."""
    kh, kw, cin, cout = w_hwio.shape
    wt = jnp.transpose(w_hwio, (3, 0, 1, 2)).reshape(cout, kh * kw, cin)
    wp = jnp.zeros((cout_p, kh * kw, cin_p), jnp.float32)
    wp = wp.at[:cout, :, :cin].set(wt.astype(jnp.float32))
    return wp.reshape(cout_p, kh * kw * cin_p)


def _pack_channel_vec(v, c_p):
    out = jnp.zeros((c_p, 1), jnp.float32)
    return out.at[:v.shape[0], 0].set(v.astype(jnp.float32))


def double_conv(x_nchw, params, eps=1e-5):
    """Fused (conv3x3 -> BN -> ReLU) * 2 on an NCHW tensor."""
    N, Ci, H, W = x_nchw.shape
    HW = H * W
    Co = params["w1"].shape[-1]
    Cip = _round_up(Ci, 8)
    Cop = _round_up(Co, 8)

    x = x_nchw.reshape(N, Ci, HW).astype(jnp.float32)   # lane-dense, no transpose
    if Cip != Ci:
        x = jnp.pad(x, ((0, 0), (0, Cip - Ci), (0, 0)))

    w1p = _pack_conv_weight(params["w1"], Cip, Cop)
    w2p = _pack_conv_weight(params["w2"], Cop, Cop)
    b1p = _pack_channel_vec(params["b1"], Cop)
    g1p = _pack_channel_vec(params["g1"], Cop)
    be1p = _pack_channel_vec(params["be1"], Cop)
    b2p = _pack_channel_vec(params["b2"], Cop)
    g2p = _pack_channel_vec(params["g2"], Cop)
    be2p = _pack_channel_vec(params["be2"], Cop)

    kernel = functools.partial(
        _double_conv_kernel, width=W, inv_cnt=1.0 / float(N * HW), eps=eps)

    flops = 2 * N * HW * 9 * (Cip * Cop + Cop * Cop)
    bytes_accessed = 4 * (N * Cip * HW + 2 * N * Cop * HW
                          + 9 * Cip * Cop + 9 * Cop * Cop + 6 * Cop)

    vec_spec = pl.BlockSpec((Cop, 1), lambda s, n: (0, 0))
    out_flat = pl.pallas_call(
        kernel,
        out_shape=jax.ShapeDtypeStruct((N, Cop, HW), jnp.float32),
        grid=(3, N),
        in_specs=[
            pl.BlockSpec((1, Cip, HW), lambda s, n: (n, 0, 0)),
            pl.BlockSpec((Cop, 9 * Cip), lambda s, n: (0, 0)),
            vec_spec, vec_spec, vec_spec,
            pl.BlockSpec((Cop, 9 * Cop), lambda s, n: (0, 0)),
            vec_spec, vec_spec, vec_spec,
        ],
        out_specs=pl.BlockSpec((1, Cop, HW), lambda s, n: (n, 0, 0)),
        scratch_shapes=[
            pltpu.VMEM((N, Cop, HW), jnp.float32),   # y1 (pre-BN1), all n
            pltpu.VMEM((N, Cop, HW), jnp.float32),   # y2 (pre-BN2), all n
            pltpu.VMEM((2, Cop, 1), jnp.float32),    # BN1 moments -> scale/shift
            pltpu.VMEM((2, Cop, 1), jnp.float32),    # BN2 moments -> scale/shift
        ],
        compiler_params=pltpu.CompilerParams(
            # Stage order and the BN-moment accumulation over n are sequential.
            dimension_semantics=("arbitrary", "arbitrary")),
        cost_estimate=pl.CostEstimate(
            flops=flops, transcendentals=0, bytes_accessed=bytes_accessed),
    )(x, w1p, b1p, g1p, be1p, w2p, b2p, g2p, be2p)

    return out_flat.reshape(N, Cop, H, W)[:, :Co]


# ----------------------------------------------------------------------------
# Glue (upsample / pad / concat) in plain JAX, NCHW throughout
# ----------------------------------------------------------------------------
def upsample_bilinear_x2_align_corners(x):
    """NCHW bilinear x2 == nn.Upsample(scale_factor=2, mode='bilinear',
    align_corners=True)."""
    N, C, H, W = x.shape
    Ho, Wo = 2 * H, 2 * W

    def coords(n_in, n_out):
        if n_in == 1:
            return jnp.zeros((n_out,), jnp.float32)
        return jnp.arange(n_out, dtype=jnp.float32) * (n_in - 1) / (n_out - 1)

    ys, xs = coords(H, Ho), coords(W, Wo)
    y0 = jnp.floor(ys).astype(jnp.int32)
    y1 = jnp.minimum(y0 + 1, H - 1)
    x0 = jnp.floor(xs).astype(jnp.int32)
    x1 = jnp.minimum(x0 + 1, W - 1)
    wy = (ys - y0.astype(jnp.float32))[None, None, :, None]
    wx = (xs - x0.astype(jnp.float32))[None, None, None, :]

    r0 = x[:, :, y0, :]
    r1 = x[:, :, y1, :]
    top = r0[:, :, :, x0] * (1.0 - wx) + r0[:, :, :, x1] * wx
    bot = r1[:, :, :, x0] * (1.0 - wx) + r1[:, :, :, x1] * wx
    return top * (1.0 - wy) + bot * wy


def up_forward(params, x1_nchw, x2_nchw):
    """Forward of `up` (bilinear=True). NCHW in, NCHW out."""
    x1 = x1_nchw.astype(jnp.float32)
    x2 = x2_nchw.astype(jnp.float32)

    x1 = upsample_bilinear_x2_align_corners(x1)

    # Reproduce the module's F.pad exactly: diffX is the H difference but pads
    # W (and diffY pads H) -- a quirk of the original code, kept verbatim.
    diffX = x2.shape[2] - x1.shape[2]
    diffY = x2.shape[3] - x1.shape[3]
    x1 = jnp.pad(x1, ((0, 0), (0, 0),
                      (diffY // 2, diffY - diffY // 2),     # H
                      (diffX // 2, diffX - diffX // 2)))    # W

    x = jnp.concatenate([x2, x1], axis=1)   # torch.cat([x2, x1], dim=1)
    return double_conv(x, params)


# ----------------------------------------------------------------------------
# Pure-JAX reference (correctness check)
# ----------------------------------------------------------------------------
def ref_forward(params, x1_nchw, x2_nchw, eps=1e-5):
    x1 = x1_nchw.astype(jnp.float32)
    x2 = x2_nchw.astype(jnp.float32)
    x1 = upsample_bilinear_x2_align_corners(x1)
    diffX = x2.shape[2] - x1.shape[2]
    diffY = x2.shape[3] - x1.shape[3]
    x1 = jnp.pad(x1, ((0, 0), (0, 0),
                      (diffY // 2, diffY - diffY // 2),
                      (diffX // 2, diffX - diffX // 2)))
    x = jnp.concatenate([x2, x1], axis=1)

    def conv(x, w, b):
        y = jax.lax.conv_general_dilated(
            x, w, (1, 1), "SAME",
            dimension_numbers=("NCHW", "HWIO", "NCHW"),
            precision=jax.lax.Precision.HIGHEST)
        return y + b.reshape(1, -1, 1, 1)

    def bnr(x, g, be):
        m = x.mean(axis=(0, 2, 3), keepdims=True)
        v = ((x - m) ** 2).mean(axis=(0, 2, 3), keepdims=True)
        xhat = (x - m) * jax.lax.rsqrt(v + eps)
        return jnp.maximum(xhat * g.reshape(1, -1, 1, 1)
                           + be.reshape(1, -1, 1, 1), 0.0)

    y = bnr(conv(x, params["w1"], params["b1"]), params["g1"], params["be1"])
    y = bnr(conv(y, params["w2"], params["b2"]), params["g2"], params["be2"])
    return y


# ----------------------------------------------------------------------------
# Main
# ----------------------------------------------------------------------------
if __name__ == "__main__":
    in_ch, out_ch = 8, 4               # up(in_ch=8, out_ch=4, bilinear=True)
    N, H, W = 2, 16, 16

    key = jax.random.PRNGKey(0)
    ks = jax.random.split(key, 10)

    params = {
        # conv weights stored HWIO: (3, 3, Cin, Cout)
        "w1": 0.1 * jax.random.normal(ks[0], (3, 3, in_ch, out_ch), jnp.float32),
        "b1": 0.1 * jax.random.normal(ks[1], (out_ch,), jnp.float32),
        "g1": 1.0 + 0.1 * jax.random.normal(ks[2], (out_ch,), jnp.float32),
        "be1": 0.1 * jax.random.normal(ks[3], (out_ch,), jnp.float32),
        "w2": 0.1 * jax.random.normal(ks[4], (3, 3, out_ch, out_ch), jnp.float32),
        "b2": 0.1 * jax.random.normal(ks[5], (out_ch,), jnp.float32),
        "g2": 1.0 + 0.1 * jax.random.normal(ks[6], (out_ch,), jnp.float32),
        "be2": 0.1 * jax.random.normal(ks[7], (out_ch,), jnp.float32),
    }

    # NCHW inputs, like the PyTorch module expects.
    x1 = jax.random.normal(ks[8], (N, in_ch // 2, H // 2, W // 2), jnp.float32)
    x2 = jax.random.normal(ks[9], (N, in_ch // 2, H, W), jnp.float32)

    fwd = jax.jit(up_forward)
    out = fwd(params, x1, x2)
    out = jax.block_until_ready(out)

    assert out.shape == (N, out_ch, H, W), out.shape

    ref = jax.block_until_ready(ref_forward(params, x1, x2))
    if not jnp.allclose(out, ref, atol=2e-3, rtol=2e-3):
        raise AssertionError(
            f"mismatch vs reference: max abs diff = {jnp.max(jnp.abs(out - ref))}")

    print("KERNEL_OK")
</pallas_src>

<mosaic_0001>
module attributes {stable_mosaic.version = 11 : i64} {
  func.func @_double_conv_kernel(%arg0: i32, %arg1: i32, %arg2: memref<1x8x256xf32, #tpu.memory_space<vmem>>, %arg3: memref<8x72xf32, #tpu.memory_space<vmem>>, %arg4: memref<8x1xf32, #tpu.memory_space<vmem>>, %arg5: memref<8x1xf32, #tpu.memory_space<vmem>>, %arg6: memref<8x1xf32, #tpu.memory_space<vmem>>, %arg7: memref<8x72xf32, #tpu.memory_space<vmem>>, %arg8: memref<8x1xf32, #tpu.memory_space<vmem>>, %arg9: memref<8x1xf32, #tpu.memory_space<vmem>>, %arg10: memref<8x1xf32, #tpu.memory_space<vmem>>, %arg11: memref<1x8x256xf32, #tpu.memory_space<vmem>>, %arg12: memref<2x8x256xf32, #tpu.memory_space<vmem>>, %arg13: memref<2x8x256xf32, #tpu.memory_space<vmem>>, %arg14: memref<2x8x1xf32, #tpu.memory_space<vmem>>, %arg15: memref<2x8x1xf32, #tpu.memory_space<vmem>>) attributes {dimension_semantics = [#tpu.dimension_semantics<arbitrary>, #tpu.dimension_semantics<arbitrary>], iteration_bounds = array<i64: 3, 2>, scalar_prefetch = 0 : i64, scratch_operands = 4 : i64, tpu.core_type = #tpu.core_type<tc>, window_params = [{transform_indices = @transform_0, window_bounds = array<i64: 1, 8, 256>}, {pipeline_mode = #tpu.pipeline_mode<synchronous>, transform_indices = @transform_1, window_bounds = array<i64: 8, 72>}, {pipeline_mode = #tpu.pipeline_mode<synchronous>, transform_indices = @transform_2, window_bounds = array<i64: 8, 1>}, {pipeline_mode = #tpu.pipeline_mode<synchronous>, transform_indices = @transform_3, window_bounds = array<i64: 8, 1>}, {pipeline_mode = #tpu.pipeline_mode<synchronous>, transform_indices = @transform_4, window_bounds = array<i64: 8, 1>}, {pipeline_mode = #tpu.pipeline_mode<synchronous>, transform_indices = @transform_5, window_bounds = array<i64: 8, 72>}, {pipeline_mode = #tpu.pipeline_mode<synchronous>, transform_indices = @transform_6, window_bounds = array<i64: 8, 1>}, {pipeline_mode = #tpu.pipeline_mode<synchronous>, transform_indices = @transform_7, window_bounds = array<i64: 8, 1>}, {pipeline_mode = #tpu.pipeline_mode<synchronous>, transform_indices = @transform_8, window_bounds = array<i64: 8, 1>}, {transform_indices = @transform_9, window_bounds = array<i64: 1, 8, 256>}]} {
    %c0_i32 = arith.constant 0 : i32
    %0 = arith.cmpi eq, %arg0, %c0_i32 : i32
    %1 = arith.extui %0 : i1 to i32
    %c0_i32_0 = arith.constant 0 : i32
    %2 = arith.cmpi ne, %1, %c0_i32_0 : i32
    scf.if %2 {
      %c0_i32_3 = arith.constant 0 : i32
      %9 = arith.cmpi eq, %arg1, %c0_i32_3 : i32
      %10 = arith.extui %9 : i1 to i32
      %c0_i32_4 = arith.constant 0 : i32
      %11 = arith.cmpi ne, %10, %c0_i32_4 : i32
      scf.if %11 {
        %cst_48 = arith.constant 0.000000e+00 : f32
        %111 = vector.broadcast %cst_48 : f32 to vector<2x8x1xf32>
        %c0_49 = arith.constant 0 : index
        %c0_50 = arith.constant 0 : index
        %c0_51 = arith.constant 0 : index
        %112 = vector.load %arg14[%c0_49, %c0_50, %c0_51] : memref<2x8x1xf32, #tpu.memory_space<vmem>>, vector<2x8x1xf32>
        tpu.vector_store %arg14[%c0_49, %c0_50, %c0_51], %111 {strides = array<i32>} : memref<2x8x1xf32, #tpu.memory_space<vmem>>, vector<2x8x1xf32>,
      } else {
      }
      %c0 = arith.constant 0 : index
      %c0_5 = arith.constant 0 : index
      %c0_6 = arith.constant 0 : index
      %12 = vector.load %arg2[%c0, %c0_5, %c0_6] : memref<1x8x256xf32, #tpu.memory_space<vmem>>, vector<1x8x256xf32>
      %13 = vector.shape_cast %12 : vector<1x8x256xf32> to vector<8x256xf32>
      %cst = arith.constant 0.000000e+00 : f32
      %14 = vector.broadcast %cst : f32 to vector<8x17xf32>
      %15 = tpu.concatenate %14, %13, %14 in 1 : vector<8x17xf32>, vector<8x256xf32>, vector<8x17xf32> -> vector<8x290xf32>
      %16 = tpu.iota {dimensions = array<i32: 1>} : vector<1x256xi32>
      %c16_i32 = arith.constant 16 : i32
      %c0_i32_7 = arith.constant 0 : i32
      %17 = arith.cmpi eq, %c16_i32, %c0_i32_7 : i32
      %c1_i32_8 = arith.constant 1 : i32
      %18 = arith.select %17, %c1_i32_8, %c16_i32 : i32
      %19 = vector.broadcast %18 : i32 to vector<1x256xi32>
      %20 = arith.remsi %16, %19 : vector<1x256xi32>
      %c0_i32_9 = arith.constant 0 : i32
      %21 = vector.broadcast %c0_i32_9 : i32 to vector<1x256xi32>
      %22 = arith.cmpi ne, %20, %21 : vector<1x256xi32>
      %c0_i32_10 = arith.constant 0 : i32
      %23 = vector.broadcast %c0_i32_10 : i32 to vector<1x256xi32>
      %24 = arith.cmpi slt, %20, %23 : vector<1x256xi32>
      %c0_i32_11 = arith.constant 0 : i32
      %25 = arith.cmpi slt, %18, %c0_i32_11 : i32
      %26 = vector.broadcast %25 : i1 to vector<1x256xi1>
      %27 = vector.broadcast %26 : vector<1x256xi1> to vector<1x256xi1>
      %28 = arith.xori %24, %27 : vector<1x256xi1>
      %29 = arith.andi %28, %22 : vector<1x256xi1>
      %30 = vector.broadcast %18 : i32 to vector<1x256xi32>
      %31 = arith.addi %20, %30 : vector<1x256xi32>
      %32 = arith.select %29, %31, %20 : vector<1x256xi1>, vector<1x256xi32>
      %33 = vector.extract_strided_slice %15 {offsets = [0, 0], sizes = [8, 256], strides = [1, 1]} : vector<8x290xf32> to vector<8x256xf32>
      %c1_i32_12 = arith.constant 1 : i32
      %34 = vector.broadcast %c1_i32_12 : i32 to vector<1x256xi32>
      %35 = arith.cmpi sge, %32, %34 : vector<1x256xi32>
      %cst_13 = arith.constant 0.000000e+00 : f32
      %36 = vector.shape_cast %35 : vector<1x256xi1> to vector<1x256xi1>
      %37 = vector.broadcast %36 : vector<1x256xi1> to vector<8x256xi1>
      %38 = vector.broadcast %cst_13 : f32 to vector<8x256xf32>
      %39 = arith.select %37, %33, %38 : vector<8x256xi1>, vector<8x256xf32>
      %40 = vector.extract_strided_slice %15 {offsets = [0, 1], sizes = [8, 256], strides = [1, 1]} : vector<8x290xf32> to vector<8x256xf32>
      %41 = vector.extract_strided_slice %15 {offsets = [0, 2], sizes = [8, 256], strides = [1, 1]} : vector<8x290xf32> to vector<8x256xf32>
      %c15_i32 = arith.constant 15 : i32
      %42 = vector.broadcast %c15_i32 : i32 to vector<1x256xi32>
      %43 = arith.cmpi slt, %32, %42 : vector<1x256xi32>
      %cst_14 = arith.constant 0.000000e+00 : f32
      %44 = vector.shape_cast %43 : vector<1x256xi1> to vector<1x256xi1>
      %45 = vector.broadcast %44 : vector<1x256xi1> to vector<8x256xi1>
      %46 = vector.broadcast %cst_14 : f32 to vector<8x256xf32>
      %47 = arith.select %45, %41, %46 : vector<8x256xi1>, vector<8x256xf32>
      %48 = vector.extract_strided_slice %15 {offsets = [0, 16], sizes = [8, 256], strides = [1, 1]} : vector<8x290xf32> to vector<8x256xf32>
      %c1_i32_15 = arith.constant 1 : i32
      %49 = vector.broadcast %c1_i32_15 : i32 to vector<1x256xi32>
      %50 = arith.cmpi sge, %32, %49 : vector<1x256xi32>
      %cst_16 = arith.constant 0.000000e+00 : f32
      %51 = vector.shape_cast %50 : vector<1x256xi1> to vector<1x256xi1>
      %52 = vector.broadcast %51 : vector<1x256xi1> to vector<8x256xi1>
      %53 = vector.broadcast %cst_16 : f32 to vector<8x256xf32>
      %54 = arith.select %52, %48, %53 : vector<8x256xi1>, vector<8x256xf32>
      %55 = vector.extract_strided_slice %15 {offsets = [0, 17], sizes = [8, 256], strides = [1, 1]} : vector<8x290xf32> to vector<8x256xf32>
      %56 = vector.extract_strided_slice %15 {offsets = [0, 18], sizes = [8, 256], strides = [1, 1]} : vector<8x290xf32> to vector<8x256xf32>
      %c15_i32_17 = arith.constant 15 : i32
      %57 = vector.broadcast %c15_i32_17 : i32 to vector<1x256xi32>
      %58 = arith.cmpi slt, %32, %57 : vector<1x256xi32>
      %cst_18 = arith.constant 0.000000e+00 : f32
      %59 = vector.shape_cast %58 : vector<1x256xi1> to vector<1x256xi1>
      %60 = vector.broadcast %59 : vector<1x256xi1> to vector<8x256xi1>
      %61 = vector.broadcast %cst_18 : f32 to vector<8x256xf32>
      %62 = arith.select %60, %56, %61 : vector<8x256xi1>, vector<8x256xf32>
      %63 = vector.extract_strided_slice %15 {offsets = [0, 32], sizes = [8, 256], strides = [1, 1]} : vector<8x290xf32> to vector<8x256xf32>
      %c1_i32_19 = arith.constant 1 : i32
      %64 = vector.broadcast %c1_i32_19 : i32 to vector<1x256xi32>
      %65 = arith.cmpi sge, %32, %64 : vector<1x256xi32>
      %cst_20 = arith.constant 0.000000e+00 : f32
      %66 = vector.shape_cast %65 : vector<1x256xi1> to vector<1x256xi1>
      %67 = vector.broadcast %66 : vector<1x256xi1> to vector<8x256xi1>
      %68 = vector.broadcast %cst_20 : f32 to vector<8x256xf32>
      %69 = arith.select %67, %63, %68 : vector<8x256xi1>, vector<8x256xf32>
      %70 = vector.extract_strided_slice %15 {offsets = [0, 33], sizes = [8, 256], strides = [1, 1]} : vector<8x290xf32> to vector<8x256xf32>
      %71 = vector.extract_strided_slice %15 {offsets = [0, 34], sizes = [8, 256], strides = [1, 1]} : vector<8x290xf32> to vector<8x256xf32>
      %c15_i32_21 = arith.constant 15 : i32
      %72 = vector.broadcast %c15_i32_21 : i32 to vector<1x256xi32>
      %73 = arith.cmpi slt, %32, %72 : vector<1x256xi32>
      %cst_22 = arith.constant 0.000000e+00 : f32
      %74 = vector.shape_cast %73 : vector<1x256xi1> to vector<1x256xi1>
      %75 = vector.broadcast %74 : vector<1x256xi1> to vector<8x256xi1>
      %76 = vector.broadcast %cst_22 : f32 to vector<8x256xf32>
      %77 = arith.select %75, %71, %76 : vector<8x256xi1>, vector<8x256xf32>
      %78 = tpu.concatenate %39, %40, %47, %54, %55, %62, %69, %70, %77 in 0 : vector<8x256xf32>, vector<8x256xf32>, vector<8x256xf32>, vector<8x256xf32>, vector<8x256xf32>, vector<8x256xf32>, vector<8x256xf32>, vector<8x256xf32>, vector<8x256xf32> -> vector<72x256xf32>
      %c0_23 = arith.constant 0 : index
      %c0_24 = arith.constant 0 : index
      %79 = vector.load %arg3[%c0_23, %c0_24] : memref<8x72xf32, #tpu.memory_space<vmem>>, vector<8x72xf32>
      %cst_25 = arith.constant dense<0.000000e+00> : vector<8x256xf32>
      %80 = tpu.matmul %79, %78, %cst_25 {dimension_numbers = #tpu.dot_dimension_numbers<[1], [0], [0], [1], [0, 0, 1, 1], [], []>} : vector<8x72xf32>, vector<72x256xf32>, vector<8x256xf32> -> vector<8x256xf32>
      %c0_26 = arith.constant 0 : index
      %c0_27 = arith.constant 0 : index
      %81 = vector.load %arg4[%c0_26, %c0_27] : memref<8x1xf32, #tpu.memory_space<vmem>>, vector<8x1xf32>
      %82 = vector.broadcast %81 : vector<8x1xf32> to vector<8x256xf32>
      %83 = arith.addf %80, %82 : vector<8x256xf32>
      %84 = arith.index_cast %arg1 : i32 to index
      %c0_28 = arith.constant 0 : index
      %c0_29 = arith.constant 0 : index
      %85 = vector.load %arg12[%84, %c0_28, %c0_29] : memref<2x8x256xf32, #tpu.memory_space<vmem>>, vector<1x8x256xf32>
      %86 = vector.shape_cast %85 : vector<1x8x256xf32> to vector<8x256xf32>
      %87 = vector.shape_cast %83 : vector<8x256xf32> to vector<1x8x256xf32>
      tpu.vector_store %arg12[%84, %c0_28, %c0_29], %87 {strides = array<i32>} : memref<2x8x256xf32, #tpu.memory_space<vmem>>, vector<1x8x256xf32>,
      %c0_30 = arith.constant 0 : index
      %c0_31 = arith.constant 0 : index
      %c0_32 = arith.constant 0 : index
      %88 = vector.load %arg14[%c0_30, %c0_31, %c0_32] : memref<2x8x1xf32, #tpu.memory_space<vmem>>, vector<1x8x1xf32>
      %89 = vector.shape_cast %88 : vector<1x8x1xf32> to vector<8x1xf32>
      %cst_33 = arith.constant dense<0.000000e+00> : vector<8xf32>
      %90 = vector.multi_reduction <add>, %83, %cst_33 [1] : vector<8x256xf32> to vector<8xf32>
      %91 = vector.shape_cast %90 : vector<8xf32> to vector<8x1xf32>
      %92 = arith.addf %89, %91 : vector<8x1xf32>
      %c0_34 = arith.constant 0 : index
      %c0_35 = arith.constant 0 : index
      %c0_36 = arith.constant 0 : index
      %93 = vector.load %arg14[%c0_34, %c0_35, %c0_36] : memref<2x8x1xf32, #tpu.memory_space<vmem>>, vector<1x8x1xf32>
      %94 = vector.shape_cast %93 : vector<1x8x1xf32> to vector<8x1xf32>
      %95 = vector.shape_cast %92 : vector<8x1xf32> to vector<1x8x1xf32>
      tpu.vector_store %arg14[%c0_34, %c0_35, %c0_36], %95 {strides = array<i32>} : memref<2x8x1xf32, #tpu.memory_space<vmem>>, vector<1x8x1xf32>,
      %c1 = arith.constant 1 : index
      %c0_37 = arith.constant 0 : index
      %c0_38 = arith.constant 0 : index
      %96 = vector.load %arg14[%c1, %c0_37, %c0_38] : memref<2x8x1xf32, #tpu.memory_space<vmem>>, vector<1x8x1xf32>
      %97 = vector.shape_cast %96 : vector<1x8x1xf32> to vector<8x1xf32>
      %98 = arith.mulf %83, %83 : vector<8x256xf32>
      %cst_39 = arith.constant dense<0.000000e+00> : vector<8xf32>
      %99 = vector.multi_reduction <add>, %98, %cst_39 [1] : vector<8x256xf32> to vector<8xf32>
      %100 = vector.shape_cast %99 : vector<8xf32> to vector<8x1xf32>
      %101 = arith.addf %97, %100 : vector<8x1xf32>
      %c1_40 = arith.constant 1 : index
      %c0_41 = arith.constant 0 : index
      %c0_42 = arith.constant 0 : index
      %102 = vector.load %arg14[%c1_40, %c0_41, %c0_42] : memref<2x8x1xf32, #tpu.memory_space<vmem>>, vector<1x8x1xf32>
      %103 = vector.shape_cast %102 : vector<1x8x1xf32> to vector<8x1xf32>
      %104 = vector.shape_cast %101 : vector<8x1xf32> to vector<1x8x1xf32>
      tpu.vector_store %arg14[%c1_40, %c0_41, %c0_42], %104 {strides = array<i32>} : memref<2x8x1xf32, #tpu.memory_space<vmem>>, vector<1x8x1xf32>,
      %c0_43 = arith.constant 0 : index
      %c0_44 = arith.constant 0 : index
      %c0_45 = arith.constant 0 : index
      %105 = vector.load %arg11[%c0_43, %c0_44, %c0_45] : memref<1x8x256xf32, #tpu.memory_space<vmem>>, vector<1x8x256xf32>
      %106 = vector.shape_cast %105 : vector<1x8x256xf32> to vector<8x256xf32>
      %107 = vector.shape_cast %83 : vector<8x256xf32> to vector<1x8x256xf32>
      tpu.vector_store %arg11[%c0_43, %c0_44, %c0_45], %107 {strides = array<i32>} : memref<1x8x256xf32, #tpu.memory_space<vmem>>, vector<1x8x256xf32>,
      %c1_i32_46 = arith.constant 1 : i32
      %108 = arith.cmpi eq, %arg1, %c1_i32_46 : i32
      %109 = arith.extui %108 : i1 to i32
      %c0_i32_47 = arith.constant 0 : i32
      %110 = arith.cmpi ne, %109, %c0_i32_47 : i32
      scf.if %110 {
        %c0_48 = arith.constant 0 : index
        %c0_49 = arith.constant 0 : index
        %c0_50 = arith.constant 0 : index
        %111 = vector.load %arg14[%c0_48, %c0_49, %c0_50] : memref<2x8x1xf32, #tpu.memory_space<vmem>>, vector<1x8x1xf32>
        %112 = vector.shape_cast %111 : vector<1x8x1xf32> to vector<8x1xf32>
        %cst_51 = arith.constant 0.001953125 : f32
        %113 = vector.broadcast %cst_51 : f32 to vector<8x1xf32>
        %114 = arith.mulf %112, %113 : vector<8x1xf32>
        %c1_52 = arith.constant 1 : index
        %c0_53 = arith.constant 0 : index
        %c0_54 = arith.constant 0 : index
        %115 = vector.load %arg14[%c1_52, %c0_53, %c0_54] : memref<2x8x1xf32, #tpu.memory_space<vmem>>, vector<1x8x1xf32>
        %116 = vector.shape_cast %115 : vector<1x8x1xf32> to vector<8x1xf32>
        %cst_55 = arith.constant 0.001953125 : f32
        %117 = vector.broadcast %cst_55 : f32 to vector<8x1xf32>
        %118 = arith.mulf %116, %117 : vector<8x1xf32>
        %119 = arith.mulf %114, %114 : vector<8x1xf32>
        %120 = arith.subf %118, %119 : vector<8x1xf32>
        %cst_56 = arith.constant 0.000000e+00 : f32
        %121 = vector.broadcast %cst_56 : f32 to vector<8x1xf32>
        %122 = arith.maximumf %120, %121 : vector<8x1xf32>
        %c0_57 = arith.constant 0 : index
        %c0_58 = arith.constant 0 : index
        %123 = vector.load %arg5[%c0_57, %c0_58] : memref<8x1xf32, #tpu.memory_space<vmem>>, vector<8x1xf32>
        %cst_59 = arith.constant 9.99999974E-6 : f32
        %124 = vector.broadcast %cst_59 : f32 to vector<8x1xf32>
        %125 = arith.addf %122, %124 : vector<8x1xf32>
        %126 = math.rsqrt %125 : vector<8x1xf32>
        %127 = arith.mulf %123, %126 : vector<8x1xf32>
        %c0_60 = arith.constant 0 : index
        %c0_61 = arith.constant 0 : index
        %c0_62 = arith.constant 0 : index
        %128 = vector.load %arg14[%c0_60, %c0_61, %c0_62] : memref<2x8x1xf32, #tpu.memory_space<vmem>>, vector<1x8x1xf32>
        %129 = vector.shape_cast %128 : vector<1x8x1xf32> to vector<8x1xf32>
        %130 = vector.shape_cast %127 : vector<8x1xf32> to vector<1x8x1xf32>
        tpu.vector_store %arg14[%c0_60, %c0_61, %c0_62], %130 {strides = array<i32>} : memref<2x8x1xf32, #tpu.memory_space<vmem>>, vector<1x8x1xf32>,
        %c0_63 = arith.constant 0 : index
        %c0_64 = arith.constant 0 : index
        %131 = vector.load %arg6[%c0_63, %c0_64] : memref<8x1xf32, #tpu.memory_space<vmem>>, vector<8x1xf32>
        %132 = arith.mulf %114, %127 : vector<8x1xf32>
        %133 = arith.subf %131, %132 : vector<8x1xf32>
        %c1_65 = arith.constant 1 : index
        %c0_66 = arith.constant 0 : index
        %c0_67 = arith.constant 0 : index
        %134 = vector.load %arg14[%c1_65, %c0_66, %c0_67] : memref<2x8x1xf32, #tpu.memory_space<vmem>>, vector<1x8x1xf32>
        %135 = vector.shape_cast %134 : vector<1x8x1xf32> to vector<8x1xf32>
        %136 = vector.shape_cast %133 : vector<8x1xf32> to vector<1x8x1xf32>
        tpu.vector_store %arg14[%c1_65, %c0_66, %c0_67], %136 {strides = array<i32>} : memref<2x8x1xf32, #tpu.memory_space<vmem>>, vector<1x8x1xf32>,
      } else {
      }
    } else {
    }
    %c1_i32 = arith.constant 1 : i32
    %3 = arith.cmpi eq, %arg0, %c1_i32 : i32
    %4 = arith.extui %3 : i1 to i32
    %c0_i32_1 = arith.constant 0 : i32
    %5 = arith.cmpi ne, %4, %c0_i32_1 : i32
    scf.if %5 {
      %c0_i32_3 = arith.constant 0 : i32
      %9 = arith.cmpi eq, %arg1, %c0_i32_3 : i32
      %10 = arith.extui %9 : i1 to i32
      %c0_i32_4 = arith.constant 0 : i32
      %11 = arith.cmpi ne, %10, %c0_i32_4 : i32
      scf.if %11 {
        %cst_54 = arith.constant 0.000000e+00 : f32
        %122 = vector.broadcast %cst_54 : f32 to vector<2x8x1xf32>
        %c0_55 = arith.constant 0 : index
        %c0_56 = arith.constant 0 : index
        %c0_57 = arith.constant 0 : index
        %123 = vector.load %arg15[%c0_55, %c0_56, %c0_57] : memref<2x8x1xf32, #tpu.memory_space<vmem>>, vector<2x8x1xf32>
        tpu.vector_store %arg15[%c0_55, %c0_56, %c0_57], %122 {strides = array<i32>} : memref<2x8x1xf32, #tpu.memory_space<vmem>>, vector<2x8x1xf32>,
      } else {
      }
      %12 = arith.index_cast %arg1 : i32 to index
      %c0 = arith.constant 0 : index
      %c0_5 = arith.constant 0 : index
      %13 = vector.load %arg12[%12, %c0, %c0_5] : memref<2x8x256xf32, #tpu.memory_space<vmem>>, vector<1x8x256xf32>
      %14 = vector.shape_cast %13 : vector<1x8x256xf32> to vector<8x256xf32>
      %c0_6 = arith.constant 0 : index
      %c0_7 = arith.constant 0 : index
      %c0_8 = arith.constant 0 : index
      %15 = vector.load %arg14[%c0_6, %c0_7, %c0_8] : memref<2x8x1xf32, #tpu.memory_space<vmem>>, vector<1x8x1xf32>
      %16 = vector.shape_cast %15 : vector<1x8x1xf32> to vector<8x1xf32>
      %17 = vector.broadcast %16 : vector<8x1xf32> to vector<8x256xf32>
      %18 = arith.mulf %14, %17 : vector<8x256xf32>
      %c1 = arith.constant 1 : index
      %c0_9 = arith.constant 0 : index
      %c0_10 = arith.constant 0 : index
      %19 = vector.load %arg14[%c1, %c0_9, %c0_10] : memref<2x8x1xf32, #tpu.memory_space<vmem>>, vector<1x8x1xf32>
      %20 = vector.shape_cast %19 : vector<1x8x1xf32> to vector<8x1xf32>
      %21 = vector.broadcast %20 : vector<8x1xf32> to vector<8x256xf32>
      %22 = arith.addf %18, %21 : vector<8x256xf32>
      %cst = arith.constant 0.000000e+00 : f32
      %23 = vector.broadcast %cst : f32 to vector<8x256xf32>
      %24 = arith.maximumf %22, %23 : vector<8x256xf32>
      %cst_11 = arith.constant 0.000000e+00 : f32
      %25 = vector.broadcast %cst_11 : f32 to vector<8x17xf32>
      %26 = tpu.concatenate %25, %24, %25 in 1 : vector<8x17xf32>, vector<8x256xf32>, vector<8x17xf32> -> vector<8x290xf32>
      %27 = tpu.iota {dimensions = array<i32: 1>} : vector<1x256xi32>
      %c16_i32 = arith.constant 16 : i32
      %c0_i32_12 = arith.constant 0 : i32
      %28 = arith.cmpi eq, %c16_i32, %c0_i32_12 : i32
      %c1_i32_13 = arith.constant 1 : i32
      %29 = arith.select %28, %c1_i32_13, %c16_i32 : i32
      %30 = vector.broadcast %29 : i32 to vector<1x256xi32>
      %31 = arith.remsi %27, %30 : vector<1x256xi32>
      %c0_i32_14 = arith.constant 0 : i32
      %32 = vector.broadcast %c0_i32_14 : i32 to vector<1x256xi32>
      %33 = arith.cmpi ne, %31, %32 : vector<1x256xi32>
      %c0_i32_15 = arith.constant 0 : i32
      %34 = vector.broadcast %c0_i32_15 : i32 to vector<1x256xi32>
      %35 = arith.cmpi slt, %31, %34 : vector<1x256xi32>
      %c0_i32_16 = arith.constant 0 : i32
      %36 = arith.cmpi slt, %29, %c0_i32_16 : i32
      %37 = vector.broadcast %36 : i1 to vector<1x256xi1>
      %38 = vector.broadcast %37 : vector<1x256xi1> to vector<1x256xi1>
      %39 = arith.xori %35, %38 : vector<1x256xi1>
      %40 = arith.andi %39, %33 : vector<1x256xi1>
      %41 = vector.broadcast %29 : i32 to vector<1x256xi32>
      %42 = arith.addi %31, %41 : vector<1x256xi32>
      %43 = arith.select %40, %42, %31 : vector<1x256xi1>, vector<1x256xi32>
      %44 = vector.extract_strided_slice %26 {offsets = [0, 0], sizes = [8, 256], strides = [1, 1]} : vector<8x290xf32> to vector<8x256xf32>
      %c1_i32_17 = arith.constant 1 : i32
      %45 = vector.broadcast %c1_i32_17 : i32 to vector<1x256xi32>
      %46 = arith.cmpi sge, %43, %45 : vector<1x256xi32>
      %cst_18 = arith.constant 0.000000e+00 : f32
      %47 = vector.shape_cast %46 : vector<1x256xi1> to vector<1x256xi1>
      %48 = vector.broadcast %47 : vector<1x256xi1> to vector<8x256xi1>
      %49 = vector.broadcast %cst_18 : f32 to vector<8x256xf32>
      %50 = arith.select %48, %44, %49 : vector<8x256xi1>, vector<8x256xf32>
      %51 = vector.extract_strided_slice %26 {offsets = [0, 1], sizes = [8, 256], strides = [1, 1]} : vector<8x290xf32> to vector<8x256xf32>
      %52 = vector.extract_strided_slice %26 {offsets = [0, 2], sizes = [8, 256], strides = [1, 1]} : vector<8x290xf32> to vector<8x256xf32>
      %c15_i32 = arith.constant 15 : i32
      %53 = vector.broadcast %c15_i32 : i32 to vector<1x256xi32>
      %54 = arith.cmpi slt, %43, %53 : vector<1x256xi32>
      %cst_19 = arith.constant 0.000000e+00 : f32
      %55 = vector.shape_cast %54 : vector<1x256xi1> to vector<1x256xi1>
      %56 = vector.broadcast %55 : vector<1x256xi1> to vector<8x256xi1>
      %57 = vector.broadcast %cst_19 : f32 to vector<8x256xf32>
      %58 = arith.select %56, %52, %57 : vector<8x256xi1>, vector<8x256xf32>
      %59 = vector.extract_strided_slice %26 {offsets = [0, 16], sizes = [8, 256], strides = [1, 1]} : vector<8x290xf32> to vector<8x256xf32>
      %c1_i32_20 = arith.constant 1 : i32
      %60 = vector.broadcast %c1_i32_20 : i32 to vector<1x256xi32>
      %61 = arith.cmpi sge, %43, %60 : vector<1x256xi32>
      %cst_21 = arith.constant 0.000000e+00 : f32
      %62 = vector.shape_cast %61 : vector<1x256xi1> to vector<1x256xi1>
      %63 = vector.broadcast %62 : vector<1x256xi1> to vector<8x256xi1>
      %64 = vector.broadcast %cst_21 : f32 to vector<8x256xf32>
      %65 = arith.select %63, %59, %64 : vector<8x256xi1>, vector<8x256xf32>
      %66 = vector.extract_strided_slice %26 {offsets = [0, 17], sizes = [8, 256], strides = [1, 1]} : vector<8x290xf32> to vector<8x256xf32>
      %67 = vector.extract_strided_slice %26 {offsets = [0, 18], sizes = [8, 256], strides = [1, 1]} : vector<8x290xf32> to vector<8x256xf32>
      %c15_i32_22 = arith.constant 15 : i32
      %68 = vector.broadcast %c15_i32_22 : i32 to vector<1x256xi32>
      %69 = arith.cmpi slt, %43, %68 : vector<1x256xi32>
      %cst_23 = arith.constant 0.000000e+00 : f32
      %70 = vector.shape_cast %69 : vector<1x256xi1> to vector<1x256xi1>
      %71 = vector.broadcast %70 : vector<1x256xi1> to vector<8x256xi1>
      %72 = vector.broadcast %cst_23 : f32 to vector<8x256xf32>
      %73 = arith.select %71, %67, %72 : vector<8x256xi1>, vector<8x256xf32>
      %74 = vector.extract_strided_slice %26 {offsets = [0, 32], sizes = [8, 256], strides = [1, 1]} : vector<8x290xf32> to vector<8x256xf32>
      %c1_i32_24 = arith.constant 1 : i32
      %75 = vector.broadcast %c1_i32_24 : i32 to vector<1x256xi32>
      %76 = arith.cmpi sge, %43, %75 : vector<1x256xi32>
      %cst_25 = arith.constant 0.000000e+00 : f32
      %77 = vector.shape_cast %76 : vector<1x256xi1> to vector<1x256xi1>
      %78 = vector.broadcast %77 : vector<1x256xi1> to vector<8x256xi1>
      %79 = vector.broadcast %cst_25 : f32 to vector<8x256xf32>
      %80 = arith.select %78, %74, %79 : vector<8x256xi1>, vector<8x256xf32>
      %81 = vector.extract_strided_slice %26 {offsets = [0, 33], sizes = [8, 256], strides = [1, 1]} : vector<8x290xf32> to vector<8x256xf32>
      %82 = vector.extract_strided_slice %26 {offsets = [0, 34], sizes = [8, 256], strides = [1, 1]} : vector<8x290xf32> to vector<8x256xf32>
      %c15_i32_26 = arith.constant 15 : i32
      %83 = vector.broadcast %c15_i32_26 : i32 to vector<1x256xi32>
      %84 = arith.cmpi slt, %43, %83 : vector<1x256xi32>
      %cst_27 = arith.constant 0.000000e+00 : f32
      %85 = vector.shape_cast %84 : vector<1x256xi1> to vector<1x256xi1>
      %86 = vector.broadcast %85 : vector<1x256xi1> to vector<8x256xi1>
      %87 = vector.broadcast %cst_27 : f32 to vector<8x256xf32>
      %88 = arith.select %86, %82, %87 : vector<8x256xi1>, vector<8x256xf32>
      %89 = tpu.concatenate %50, %51, %58, %65, %66, %73, %80, %81, %88 in 0 : vector<8x256xf32>, vector<8x256xf32>, vector<8x256xf32>, vector<8x256xf32>, vector<8x256xf32>, vector<8x256xf32>, vector<8x256xf32>, vector<8x256xf32>, vector<8x256xf32> -> vector<72x256xf32>
      %c0_28 = arith.constant 0 : index
      %c0_29 = arith.constant 0 : index
      %90 = vector.load %arg7[%c0_28, %c0_29] : memref<8x72xf32, #tpu.memory_space<vmem>>, vector<8x72xf32>
      %cst_30 = arith.constant dense<0.000000e+00> : vector<8x256xf32>
      %91 = tpu.matmul %90, %89, %cst_30 {dimension_numbers = #tpu.dot_dimension_numbers<[1], [0], [0], [1], [0, 0, 1, 1], [], []>} : vector<8x72xf32>, vector<72x256xf32>, vector<8x256xf32> -> vector<8x256xf32>
      %c0_31 = arith.constant 0 : index
      %c0_32 = arith.constant 0 : index
      %92 = vector.load %arg8[%c0_31, %c0_32] : memref<8x1xf32, #tpu.memory_space<vmem>>, vector<8x1xf32>
      %93 = vector.broadcast %92 : vector<8x1xf32> to vector<8x256xf32>
      %94 = arith.addf %91, %93 : vector<8x256xf32>
      %95 = arith.index_cast %arg1 : i32 to index
      %c0_33 = arith.constant 0 : index
      %c0_34 = arith.constant 0 : index
      %96 = vector.load %arg13[%95, %c0_33, %c0_34] : memref<2x8x256xf32, #tpu.memory_space<vmem>>, vector<1x8x256xf32>
      %97 = vector.shape_cast %96 : vector<1x8x256xf32> to vector<8x256xf32>
      %98 = vector.shape_cast %94 : vector<8x256xf32> to vector<1x8x256xf32>
      tpu.vector_store %arg13[%95, %c0_33, %c0_34], %98 {strides = array<i32>} : memref<2x8x256xf32, #tpu.memory_space<vmem>>, vector<1x8x256xf32>,
      %c0_35 = arith.constant 0 : index
      %c0_36 = arith.constant 0 : index
      %c0_37 = arith.constant 0 : index
      %99 = vector.load %arg15[%c0_35, %c0_36, %c0_37] : memref<2x8x1xf32, #tpu.memory_space<vmem>>, vector<1x8x1xf32>
      %100 = vector.shape_cast %99 : vector<1x8x1xf32> to vector<8x1xf32>
      %cst_38 = arith.constant dense<0.000000e+00> : vector<8xf32>
      %101 = vector.multi_reduction <add>, %94, %cst_38 [1] : vector<8x256xf32> to vector<8xf32>
      %102 = vector.shape_cast %101 : vector<8xf32> to vector<8x1xf32>
      %103 = arith.addf %100, %102 : vector<8x1xf32>
      %c0_39 = arith.constant 0 : index
      %c0_40 = arith.constant 0 : index
      %c0_41 = arith.constant 0 : index
      %104 = vector.load %arg15[%c0_39, %c0_40, %c0_41] : memref<2x8x1xf32, #tpu.memory_space<vmem>>, vector<1x8x1xf32>
      %105 = vector.shape_cast %104 : vector<1x8x1xf32> to vector<8x1xf32>
      %106 = vector.shape_cast %103 : vector<8x1xf32> to vector<1x8x1xf32>
      tpu.vector_store %arg15[%c0_39, %c0_40, %c0_41], %106 {strides = array<i32>} : memref<2x8x1xf32, #tpu.memory_space<vmem>>, vector<1x8x1xf32>,
      %c1_42 = arith.constant 1 : index
      %c0_43 = arith.constant 0 : index
      %c0_44 = arith.constant 0 : index
      %107 = vector.load %arg15[%c1_42, %c0_43, %c0_44] : memref<2x8x1xf32, #tpu.memory_space<vmem>>, vector<1x8x1xf32>
      %108 = vector.shape_cast %107 : vector<1x8x1xf32> to vector<8x1xf32>
      %109 = arith.mulf %94, %94 : vector<8x256xf32>
      %cst_45 = arith.constant dense<0.000000e+00> : vector<8xf32>
      %110 = vector.multi_reduction <add>, %109, %cst_45 [1] : vector<8x256xf32> to vector<8xf32>
      %111 = vector.shape_cast %110 : vector<8xf32> to vector<8x1xf32>
      %112 = arith.addf %108, %111 : vector<8x1xf32>
      %c1_46 = arith.constant 1 : index
      %c0_47 = arith.constant 0 : index
      %c0_48 = arith.constant 0 : index
      %113 = vector.load %arg15[%c1_46, %c0_47, %c0_48] : memref<2x8x1xf32, #tpu.memory_space<vmem>>, vector<1x8x1xf32>
      %114 = vector.shape_cast %113 : vector<1x8x1xf32> to vector<8x1xf32>
      %115 = vector.shape_cast %112 : vector<8x1xf32> to vector<1x8x1xf32>
      tpu.vector_store %arg15[%c1_46, %c0_47, %c0_48], %115 {strides = array<i32>} : memref<2x8x1xf32, #tpu.memory_space<vmem>>, vector<1x8x1xf32>,
      %c0_49 = arith.constant 0 : index
      %c0_50 = arith.constant 0 : index
      %c0_51 = arith.constant 0 : index
      %116 = vector.load %arg11[%c0_49, %c0_50, %c0_51] : memref<1x8x256xf32, #tpu.memory_space<vmem>>, vector<1x8x256xf32>
      %117 = vector.shape_cast %116 : vector<1x8x256xf32> to vector<8x256xf32>
      %118 = vector.shape_cast %94 : vector<8x256xf32> to vector<1x8x256xf32>
      tpu.vector_store %arg11[%c0_49, %c0_50, %c0_51], %118 {strides = array<i32>} : memref<1x8x256xf32, #tpu.memory_space<vmem>>, vector<1x8x256xf32>,
      %c1_i32_52 = arith.constant 1 : i32
      %119 = arith.cmpi eq, %arg1, %c1_i32_52 : i32
      %120 = arith.extui %119 : i1 to i32
      %c0_i32_53 = arith.constant 0 : i32
      %121 = arith.cmpi ne, %120, %c0_i32_53 : i32
      scf.if %121 {
        %c0_54 = arith.constant 0 : index
        %c0_55 = arith.constant 0 : index
        %c0_56 = arith.constant 0 : index
        %122 = vector.load %arg15[%c0_54, %c0_55, %c0_56] : memref<2x8x1xf32, #tpu.memory_space<vmem>>, vector<1x8x1xf32>
        %123 = vector.shape_cast %122 : vector<1x8x1xf32> to vector<8x1xf32>
        %cst_57 = arith.constant 0.001953125 : f32
        %124 = vector.broadcast %cst_57 : f32 to vector<8x1xf32>
        %125 = arith.mulf %123, %124 : vector<8x1xf32>
        %c1_58 = arith.constant 1 : index
        %c0_59 = arith.constant 0 : index
        %c0_60 = arith.constant 0 : index
        %126 = vector.load %arg15[%c1_58, %c0_59, %c0_60] : memref<2x8x1xf32, #tpu.memory_space<vmem>>, vector<1x8x1xf32>
        %127 = vector.shape_cast %126 : vector<1x8x1xf32> to vector<8x1xf32>
        %cst_61 = arith.constant 0.001953125 : f32
        %128 = vector.broadcast %cst_61 : f32 to vector<8x1xf32>
        %129 = arith.mulf %127, %128 : vector<8x1xf32>
        %130 = arith.mulf %125, %125 : vector<8x1xf32>
        %131 = arith.subf %129, %130 : vector<8x1xf32>
        %cst_62 = arith.constant 0.000000e+00 : f32
        %132 = vector.broadcast %cst_62 : f32 to vector<8x1xf32>
        %133 = arith.maximumf %131, %132 : vector<8x1xf32>
        %c0_63 = arith.constant 0 : index
        %c0_64 = arith.constant 0 : index
        %134 = vector.load %arg9[%c0_63, %c0_64] : memref<8x1xf32, #tpu.memory_space<vmem>>, vector<8x1xf32>
        %cst_65 = arith.constant 9.99999974E-6 : f32
        %135 = vector.broadcast %cst_65 : f32 to vector<8x1xf32>
        %136 = arith.addf %133, %135 : vector<8x1xf32>
        %137 = math.rsqrt %136 : vector<8x1xf32>
        %138 = arith.mulf %134, %137 : vector<8x1xf32>
        %c0_66 = arith.constant 0 : index
        %c0_67 = arith.constant 0 : index
        %c0_68 = arith.constant 0 : index
        %139 = vector.load %arg15[%c0_66, %c0_67, %c0_68] : memref<2x8x1xf32, #tpu.memory_space<vmem>>, vector<1x8x1xf32>
        %140 = vector.shape_cast %139 : vector<1x8x1xf32> to vector<8x1xf32>
        %141 = vector.shape_cast %138 : vector<8x1xf32> to vector<1x8x1xf32>
        tpu.vector_store %arg15[%c0_66, %c0_67, %c0_68], %141 {strides = array<i32>} : memref<2x8x1xf32, #tpu.memory_space<vmem>>, vector<1x8x1xf32>,
        %c0_69 = arith.constant 0 : index
        %c0_70 = arith.constant 0 : index
        %142 = vector.load %arg10[%c0_69, %c0_70] : memref<8x1xf32, #tpu.memory_space<vmem>>, vector<8x1xf32>
        %143 = arith.mulf %125, %138 : vector<8x1xf32>
        %144 = arith.subf %142, %143 : vector<8x1xf32>
        %c1_71 = arith.constant 1 : index
        %c0_72 = arith.constant 0 : index
        %c0_73 = arith.constant 0 : index
        %145 = vector.load %arg15[%c1_71, %c0_72, %c0_73] : memref<2x8x1xf32, #tpu.memory_space<vmem>>, vector<1x8x1xf32>
        %146 = vector.shape_cast %145 : vector<1x8x1xf32> to vector<8x1xf32>
        %147 = vector.shape_cast %144 : vector<8x1xf32> to vector<1x8x1xf32>
        tpu.vector_store %arg15[%c1_71, %c0_72, %c0_73], %147 {strides = array<i32>} : memref<2x8x1xf32, #tpu.memory_space<vmem>>, vector<1x8x1xf32>,
      } else {
      }
    } else {
    }
    %c2_i32 = arith.constant 2 : i32
    %6 = arith.cmpi eq, %arg0, %c2_i32 : i32
    %7 = arith.extui %6 : i1 to i32
    %c0_i32_2 = arith.constant 0 : i32
    %8 = arith.cmpi ne, %7, %c0_i32_2 : i32
    scf.if %8 {
      %9 = arith.index_cast %arg1 : i32 to index
      %c0 = arith.constant 0 : index
      %c0_3 = arith.constant 0 : index
      %10 = vector.load %arg13[%9, %c0, %c0_3] : memref<2x8x256xf32, #tpu.memory_space<vmem>>, vector<1x8x256xf32>
      %11 = vector.shape_cast %10 : vector<1x8x256xf32> to vector<8x256xf32>
      %c0_4 = arith.constant 0 : index
      %c0_5 = arith.constant 0 : index
      %c0_6 = arith.constant 0 : index
      %12 = vector.load %arg15[%c0_4, %c0_5, %c0_6] : memref<2x8x1xf32, #tpu.memory_space<vmem>>, vector<1x8x1xf32>
      %13 = vector.shape_cast %12 : vector<1x8x1xf32> to vector<8x1xf32>
      %14 = vector.broadcast %13 : vector<8x1xf32> to vector<8x256xf32>
      %15 = arith.mulf %11, %14 : vector<8x256xf32>
      %c1 = arith.constant 1 : index
      %c0_7 = arith.constant 0 : index
      %c0_8 = arith.constant 0 : index
      %16 = vector.load %arg15[%c1, %c0_7, %c0_8] : memref<2x8x1xf32, #tpu.memory_space<vmem>>, vector<1x8x1xf32>
      %17 = vector.shape_cast %16 : vector<1x8x1xf32> to vector<8x1xf32>
      %18 = vector.broadcast %17 : vector<8x1xf32> to vector<8x256xf32>
      %19 = arith.addf %15, %18 : vector<8x256xf32>
      %cst = arith.constant 0.000000e+00 : f32
      %20 = vector.broadcast %cst : f32 to vector<8x256xf32>
      %21 = arith.maximumf %19, %20 : vector<8x256xf32>
      %c0_9 = arith.constant 0 : index
      %c0_10 = arith.constant 0 : index
      %c0_11 = arith.constant 0 : index
      %22 = vector.load %arg11[%c0_9, %c0_10, %c0_11] : memref<1x8x256xf32, #tpu.memory_space<vmem>>, vector<1x8x256xf32>
      %23 = vector.shape_cast %22 : vector<1x8x256xf32> to vector<8x256xf32>
      %24 = vector.shape_cast %21 : vector<8x256xf32> to vector<1x8x256xf32>
      tpu.vector_store %arg11[%c0_9, %c0_10, %c0_11], %24 {strides = array<i32>} : memref<1x8x256xf32, #tpu.memory_space<vmem>>, vector<1x8x256xf32>,
    } else {
    }
    return
  }
  func.func @transform_0(%arg0: i32, %arg1: i32) -> (i32, i32, i32) {
    %c0_i32 = arith.constant 0 : i32
    %c0_i32_0 = arith.constant 0 : i32
    %c0_i32_1 = arith.constant 0 : i32
    return %arg1, %c0_i32, %c0_i32_0 : i32, i32, i32
  }
  func.func @transform_1(%arg0: i32, %arg1: i32) -> (i32, i32) {
    %c0_i32 = arith.constant 0 : i32
    %c0_i32_0 = arith.constant 0 : i32
    %c0_i32_1 = arith.constant 0 : i32
    return %c0_i32, %c0_i32_0 : i32, i32
  }
  func.func @transform_2(%arg0: i32, %arg1: i32) -> (i32, i32) {
    %c0_i32 = arith.constant 0 : i32
    %c0_i32_0 = arith.constant 0 : i32
    %c0_i32_1 = arith.constant 0 : i32
    return %c0_i32, %c0_i32_0 : i32, i32
  }
  func.func @transform_3(%arg0: i32, %arg1: i32) -> (i32, i32) {
    %c0_i32 = arith.constant 0 : i32
    %c0_i32_0 = arith.constant 0 : i32
    %c0_i32_1 = arith.constant 0 : i32
    return %c0_i32, %c0_i32_0 : i32, i32
  }
  func.func @transform_4(%arg0: i32, %arg1: i32) -> (i32, i32) {
    %c0_i32 = arith.constant 0 : i32
    %c0_i32_0 = arith.constant 0 : i32
    %c0_i32_1 = arith.constant 0 : i32
    return %c0_i32, %c0_i32_0 : i32, i32
  }
  func.func @transform_5(%arg0: i32, %arg1: i32) -> (i32, i32) {
    %c0_i32 = arith.constant 0 : i32
    %c0_i32_0 = arith.constant 0 : i32
    %c0_i32_1 = arith.constant 0 : i32
    return %c0_i32, %c0_i32_0 : i32, i32
  }
  func.func @transform_6(%arg0: i32, %arg1: i32) -> (i32, i32) {
    %c0_i32 = arith.constant 0 : i32
    %c0_i32_0 = arith.constant 0 : i32
    %c0_i32_1 = arith.constant 0 : i32
    return %c0_i32, %c0_i32_0 : i32, i32
  }
  func.func @transform_7(%arg0: i32, %arg1: i32) -> (i32, i32) {
    %c0_i32 = arith.constant 0 : i32
    %c0_i32_0 = arith.constant 0 : i32
    %c0_i32_1 = arith.constant 0 : i32
    return %c0_i32, %c0_i32_0 : i32, i32
  }
  func.func @transform_8(%arg0: i32, %arg1: i32) -> (i32, i32) {
    %c0_i32 = arith.constant 0 : i32
    %c0_i32_0 = arith.constant 0 : i32
    %c0_i32_1 = arith.constant 0 : i32
    return %c0_i32, %c0_i32_0 : i32, i32
  }
  func.func @transform_9(%arg0: i32, %arg1: i32) -> (i32, i32, i32) {
    %c0_i32 = arith.constant 0 : i32
    %c0_i32_0 = arith.constant 0 : i32
    %c0_i32_1 = arith.constant 0 : i32
    return %arg1, %c0_i32, %c0_i32_0 : i32, i32, i32
  }
}

</mosaic_0001>

<bundles_post_ra>
// kernel: up_forward.1
= control target key start
LH: loop header
LB: loop body
LE: loop exit
PB: predicated region body
PF: predicated region fallthrough
CT: control target
= control target key end

     0   :  { %s1422_s30 = smov 0   ;;  %s1424_s10 = smov 0   ;;  %s1658_s0 = inlined_call_operand.vmem [shape: f32[2,8,256], index: 0, kind: input, shape index: {}]   ;;  %s1659_s1 = inlined_call_operand.vmem [shape: f32[8,72], index: 1, kind: input, shape index: {}]   ;;  %s1660_s2 = inlined_call_operand.vmem [shape: f32[8,1], index: 2, kind: input, shape index: {}]   ;;  %s1661_s3 = inlined_call_operand.vmem [shape: f32[8,1], index: 3, kind: input, shape index: {}]   ;;  %s1662_s4 = inlined_call_operand.vmem [shape: f32[8,1], index: 4, kind: input, shape index: {}]   ;;  %s1663_s5 = inlined_call_operand.vmem [shape: f32[8,72], index: 5, kind: input, shape index: {}]   ;;  %s1664_s6 = inlined_call_operand.vmem [shape: f32[8,1], index: 6, kind: input, shape index: {}]   ;;  %s1665_s7 = inlined_call_operand.vmem [shape: f32[8,1], index: 7, kind: input, shape index: {}]   ;;  %s1666_s8 = inlined_call_operand.vmem [shape: f32[8,1], index: 8, kind: input, shape index: {}]   ;;  %s1667_s9 = inlined_call_operand.vmem [shape: f32[2,8,256], index: 9, kind: output, shape index: {}]  }
   0x1   :  { %s1426_s11 = smov 0   ;;  %s1428_s12 = smov 0  }
   0x2   :  { %s1430_s13 = smov 0  }
   0x3 LB: > { %s28_s14 = sadd.s32 1, %s1335_s11  ;;  %s31_s15 = sadd.s32 1, %s1339_s12  ;;  %s1343_s13 = sphi %s1430_s13, %s19_s13   ;;  %s1339_s12 = sphi %s1428_s12, %s1695_s12   ;;  %s1335_s11 = sphi %s1426_s11, %s1694_s11   ;;  %s1331_s10 = sphi %s1424_s10, %s1693_s10   ;;  %s1327_s30 = sphi %s1422_s30, %s1692_s30  }
   0x4   : > { %p29_p0 = scmp.ge.s32.totalorder %s28_s14, 2  ;;  %p1058_p1 = scmp.ge.s32.totalorder %s1343_s13, 1 }
   0x5   : > { %p299_p2 = scmp.lt.s32.totalorder %s1343_s13, 7 }
   0x6   : > { %s1697_s14 = smov (%p29_p0, %s28_s14), 0  ;;  %s1699_s15 = smov (!%p29_p0, %s31_s15), %s1339_s12 }
   0x7   : > { %p300_p3 = pnand %p1058_p1, %p299_p2  ;;  %p33_p4 = scmp.ge.s32.totalorder %s1699_s15, 3 }
   0x8   : > { %p335_p5 = scmp.lt.s32.totalorder (!%p300_p3), %s1327_s30, 1  ;;  %p1063_p6 = scmp.ne.s32.totalorder (!%p300_p3), %s1331_s10, 0 }
   0x9   : > { %s1701_s15 = smov (%p33_p4, %s1699_s15), 0  ;;  %303 = sbr.rel (%p300_p3) target bundleno = 1666 (0x682), region = 56 }
  0x10   : > { %s336_s16 = scalar_select %p335_p5, %s1327_s30, 1 }
  0x11   : > { %348 = sbr.rel (%p1063_p6) target bundleno = 702 (0x2be), region = 60  ;;  %p1064_p7 = scmp.ne.s32.totalorder (!%p1063_p6), %s1327_s30, 0 }
  0x12   : > { %s1105_s17 = sshll.u32 %s336_s16, 4 }
  0x13   : > { %s339_s20 = scalar_lea.vmem %s1658_s0, %s1105_s17  ;;  %s1464_s23 = scalar_lea.vmem %s1667_s9, %s1105_s17 }
  0x18   : > { %352 = sbr.rel (%p1064_p7) target bundleno = 31 (0x1f), region = 64  ;;  %vm353_vm0 = vcmask (!%p1064_p7), 7168   ;;  %v1345_v0 = vmov (!%p1064_p7), 0.0  }
  0x19   : > { %354 = vst.msk [vmem:[#allocation4] sm:$0xff] (!%p1064_p7), %vm353_vm0, %v1345_v0  ;;  %355 = vst.msk [vmem:[#allocation4 + $0x8] sm:$0xff] (!%p1064_p7), %vm353_vm0, %v1345_v0 }
  0x1f PF: > { %v356_v1 = vld [vmem:[%s339_s20] sm:$0xff]  ;;  %s1346_s24 = smov 17   ;;  %v357_v2 = vld [vmem:[%s339_s20 + $0x8] sm:$0xff]  ;;  %vm364_vm1 = vcmask 138240   ;;  %s1347_s25 = smov 126   ;;  %v1353_v9 = vmov 0.0   ;;  %v371_v12 = vlaneseq }
  0x20   : > { %360 = vrot.lane.b32.xlu0 %v356_v1, %s1346_s24  ;;  %s1348_s26 = smov 127   ;;  %s1349_s27 = smov 110   ;;  %587 = vmatprep.mubr.f32.mxu0 %v1353_v9  ;;  %v1356_v10 = vmov 0   ;;  %v513_v11 = vld [vmem:[%s1660_s2] sm:$0xff]  ;;  %vm485_vm2 = vcmask 1039360   ;;  %vm1357_vm5 = vmmov 1  }
  0x21   : > { %s1350_s28 = smov 112   ;;  %s1351_s29 = smov 96   ;;  %1261 = vset.pattern.permute.xlu1 %v1356_v10  ;;  %1262 = vset.pattern.permute.xlu0 %v1356_v10  ;;  %v372_v13 = vand.u32 127, %v371_v12  ;;  %vm420_vm8 = vcmask 1031168   ;;  %vm433_vm10 = vcmask 916480   ;;  %vm446_vm14 = vcmask 900096  }
  0x22   : > { %s1352_s16 = smov 111   ;;  %s1354_s17 = smov 94   ;;  %vm496_vm15 = vcmask 908288   ;;  %v599_v24 = vld [vmem:[#allocation4] sm:$0xff] }
  0x23   : > { %s1355_s18 = smov 95   ;;  %v373_v14 = vadd.s32 128, %v372_v13  ;;  %v378_v16 = vand.u32 15, %v372_v13  ;;  %v512_v13 = vld [vmem:[%s1659_s1] sm:$0xff]  ;;  %p1080_p8 = scmp.ne.s32.totalorder %s1327_s30, 1 }
  0x24   : > { %362 = vrot.lane.b32.xlu0 %v357_v2, %s1346_s24  ;;  %s1107_s24 = sshll.u32 %s1327_s30, 4  ;;  %v628_v38 = vld [vmem:[%s1661_s3] sm:$0xff] (!%p1080_p8) }
  0x25   : > { %v385_v15 = vand.u32 15, %v373_v14  ;;  %vm1475_vm4 = vcmp.ge.s32.totalorder %v378_v16, 1  ;;  %vm1501_vm11 = vcmp.lt.s32.totalorder %v378_v16, 15 }
  0x26   : > { %vm1489_vm7 = vmpackc.low %vm1357_vm5, %vm1475_vm4 }
  0x27   : > { %vm1471_vm3 = vcmp.ge.s32.totalorder %v385_v15, 1  ;;  %vm1495_vm9 = vcmp.lt.s32.totalorder %v385_v15, 15  ;;  %vm1121_vm13 = vmpackc.low %vm1475_vm4, %vm1501_vm11  ;;  %vm472_vm4 = vcmask 769024  }
  0x28   : > { %vm1482_vm6 = vmpackc.low %vm1357_vm5, %vm1471_vm3 }
  0x29   : > { %vm1118_vm12 = vmpackc.low %vm1471_vm3, %vm1495_vm9  ;;  %vm507_vm3 = vcmask 777216  }
  0x2a   : > { %vm1124_vm0 = vmpackc.low %vm1495_vm9, %vm1357_vm5 }
  0x92   : > { %v361_v3 = vpop.permute.xlu0 %360 }
  0x93   : > { %v369_v8 = vsel %vm364_vm1, 0.0, %v361_v3 }
  0x96   : > { %v363_v4 = vpop.permute.xlu0 %362 }
  0x97   : > { %v365_v5 = vsel %vm364_vm1, %v361_v3, %v363_v4  ;;  %v370_v6 = vsel %vm364_vm1, %v363_v4, 0.0  ;;  %vm1127_vm1 = vmpackc.low %vm1501_vm11, %vm1357_vm5  ;;  %vm519_vm5 = vcmask 588800  }
  0x98   : > { %v1231_v7 = vpack.i.bf16 %v370_v6, %v365_v5 }
  0x9a   : > { %1232 = vrot.lane.b32.xlu0 %v1231_v7, %s1347_s25  ;;  %1227 = vrot.lane.b32.xlu1 %v1231_v7, %s1348_s26 }
  0x9e   : > { %414 = vrot.lane.b32.xlu0 %v369_v8, %s1347_s25  ;;  %479 = vrot.lane.b32.xlu1 %v369_v8, %s1348_s26  ;;  %s596_s25 = scalar_lea.vmem [#allocation2], %s1107_s24 }
  0xa2   : > { %1242 = vrot.lane.b32.xlu0 %v1231_v7, %s1349_s27  ;;  %1237 = vrot.lane.b32.xlu1 %v1231_v7, %s1350_s28 }
  0xa6   : > { %440 = vrot.lane.b32.xlu0 %v369_v8, %s1349_s27  ;;  %427 = vrot.lane.b32.xlu1 %v369_v8, %s1350_s28 }
  0xaa   : > { %1252 = vrot.lane.b32.xlu0 %v1231_v7, %s1351_s29  ;;  %1247 = vrot.lane.b32.xlu1 %v1231_v7, %s1352_s16 }
  0xae   : > { %453 = vrot.lane.b32.xlu0 %v369_v8, %s1351_s29  ;;  %490 = vrot.lane.b32.xlu1 %v369_v8, %s1352_s16 }
  0xb2   : > { %468 = vrot.lane.b32.xlu0 %v365_v5, %s1354_s17  ;;  %1257 = vrot.lane.b32.xlu1 %v1231_v7, %s1355_s18 }
  0xb6   : > { %466 = vrot.lane.b32.xlu0 %v369_v8, %s1354_s17  ;;  %501 = vrot.lane.b32.xlu1 %v369_v8, %s1355_s18 }
  0xba   : > { %470 = vrot.lane.b32.xlu1 %v370_v6, %s1354_s17 }
  0xbe   : > { %516 = vperm.xlu1 %1261, %v513_v11  }
 0x10c   : > { %v1233_v17 = vpop.permute.xlu0 %1232  ;;  %v1228_v18 = vpop.permute.xlu1 %1227 }
 0x10d   : > { %v1230_v20 = vunpack.i.h.bf16 %v1228_v18  ;;  %v1229_v21 = vunpack.i.l.bf16 %v1228_v18  ;;  %v1235_v31 = vunpack.i.h.bf16 %v1233_v17  ;;  %v1234_v32 = vunpack.i.l.bf16 %v1233_v17 }
 0x10f   : > { %v487_v23 = vsel %vm485_vm2, %v1229_v21, %v1230_v20  ;;  %v422_v39 = vsel %vm420_vm8, %v1234_v32, %v1235_v31 }
 0x110   : > { %v415_v25 = vpop.permute.xlu0 %414  ;;  %v480_v26 = vpop.permute.xlu1 %479  ;;  %v1111_v27 = vpack.c.bf16 %v487_v23, %v365_v5 }
 0x111   : > { %v486_v28 = vsel %vm485_vm2, %v480_v26, %v1229_v21  ;;  %v421_v44 = vsel %vm420_vm8, %v415_v25, %v1234_v32  ;;  %vm459_vm2 = vcmask 785408   ;;  %v607_v26 = vld [vmem:[#allocation4 + $0x8] sm:$0xff] }
 0x112   : > { %v1114_v30 = vpack.c.bf16 %v486_v28, %v369_v8  ;;  %1113 = vmatprep.subr.msk.bf16.mxu0 %vm1482_vm6, %v1111_v27 }
 0x114   : > { %v1243_v34 = vpop.permute.xlu0 %1242  ;;  %v1238_v35 = vpop.permute.xlu1 %1237  ;;  %1116 = vmatpush1.bf16.msk.msra.mxu0 %vm1489_vm7, %v1114_v30 }
 0x115   : > { %v1240_v36 = vunpack.i.h.bf16 %v1238_v35  ;;  %v1239_v37 = vunpack.i.l.bf16 %v1238_v35  ;;  %v1245_v47 = vunpack.i.h.bf16 %v1243_v34  ;;  %v1244_v48 = vunpack.i.l.bf16 %v1243_v34 }
 0x117   : > { %v435_v40 = vsel %vm433_vm10, %v1239_v37, %v1240_v36  ;;  %v448_v53 = vsel %vm446_vm14, %v1244_v48, %v1245_v47 }
 0x118   : > { %v441_v41 = vpop.permute.xlu0 %440  ;;  %v428_v42 = vpop.permute.xlu1 %427  ;;  %v1117_v43 = vpack.c.bf16 %v435_v40, %v422_v39 }
 0x119   : > { %v434_v45 = vsel %vm433_vm10, %v428_v42, %v1239_v37  ;;  %v447_v58 = vsel %vm446_vm14, %v441_v41, %v1244_v48  ;;  %v633_v41 = vld [vmem:[%s1662_s4] sm:$0xff] (!%p1080_p8) }
 0x11a   : > { %v1120_v46 = vpack.c.bf16 %v434_v45, %v421_v44  ;;  %1119 = vmatprep.subr.msk.bf16.mxu0 %vm1118_vm12, %v1117_v43 }
 0x11c   : > { %v1253_v49 = vpop.permute.xlu0 %1252  ;;  %v1248_v50 = vpop.permute.xlu1 %1247  ;;  %1122 = vmatpush1.bf16.msk.msra.mxu0 %vm1121_vm13, %v1120_v46 }
 0x11d   : > { %v1250_v51 = vunpack.i.h.bf16 %v1248_v50  ;;  %v1249_v52 = vunpack.i.l.bf16 %v1248_v50  ;;  %v1255_v61 = vunpack.i.h.bf16 %v1253_v49  ;;  %v1254_v62 = vunpack.i.l.bf16 %v1253_v49 }
 0x11f   : > { %v498_v54 = vsel %vm496_vm15, %v1249_v52, %v1250_v51  ;;  %v461_v3 = vsel %vm459_vm2, %v1254_v62, %v1255_v61 }
 0x120   : > { %v454_v55 = vpop.permute.xlu0 %453  ;;  %v491_v56 = vpop.permute.xlu1 %490  ;;  %v1123_v57 = vpack.c.bf16 %v448_v53, %v498_v54 }
 0x121   : > { %v497_v59 = vsel %vm496_vm15, %v491_v56, %v1249_v52  ;;  %v460_v7 = vsel %vm459_vm2, %v454_v55, %v1254_v62 }
 0x122   : > { %v1126_v60 = vpack.c.bf16 %v447_v58, %v497_v59  ;;  %1125 = vmatprep.subr.msk.bf16.mxu0 %vm1124_vm0, %v1123_v57 }
 0x124   : > { %v1258_v63 = vpop.permute.xlu1 %1257  ;;  %1128 = vmatpush1.bf16.msk.msra.mxu0 %vm1127_vm1, %v1126_v60  ;;  %v469_v2 = vpop.permute.xlu0 %468 }
 0x125   : > { %v1260_v0 = vunpack.i.h.bf16 %v1258_v63  ;;  %v1259_v1 = vunpack.i.l.bf16 %v1258_v63 }
 0x127   : > { %v509_v4 = vsel %vm507_vm3, %v1259_v1, %v1260_v0 }
 0x128   : > { %v502_v5 = vpop.permute.xlu1 %501  ;;  %v1129_v6 = vpack.c.bf16 %v509_v4, %v461_v3  ;;  %v467_v10 = vpop.permute.xlu0 %466 }
 0x129   : > { %v508_v8 = vsel %vm507_vm3, %v502_v5, %v1259_v1  ;;  %v473_v14 = vsel %vm472_vm4, %v467_v10, %v469_v2 }
 0x12a   : > { %v1132_v9 = vpack.c.bf16 %v508_v8, %v460_v7  ;;  %1131 = vmatprep.subr.msk.bf16.mxu0 %vm1482_vm6, %v1129_v6  ;;  %vm604_vm6 = vcmask 7168  }
 0x12c   : > { %v471_v11 = vpop.permute.xlu1 %470  ;;  %1134 = vmatpush1.bf16.msk.msra.mxu0 %vm1489_vm7, %v1132_v9 }
 0x12d   : > { %v474_v12 = vsel %vm472_vm4, %v469_v2, %v471_v11 }
 0x12e   : > { %1075 = vmatprep.subr.msk.mxu0 %vm1495_vm9, %v474_v12 }
 0x130   : > { %1076 = vmatpush1.msk.msra.mxu0 %vm1501_vm11, %v473_v14 }
 0x131   : > { %1077 = vmatmul.mubr.msk.f32.vlgmr.msra.gmra.mrb[0].mxu0 %vm519_vm5, %v512_v13 }
 0x13d   : > { %v517_v15 = vpop.permute.xlu1 %516 }
 0x204   : > { %v589_v16 = vpop.f32.mrb[0].mxu0 }
 0x205   : > { %v590_v17 = vadd.f32 %v589_v16, %v517_v15  ;;  %v591_v18 = vpop.f32.mrb[1].mxu0 }
 0x206   : > { %v592_v19 = vadd.f32 %v591_v18, %v517_v15 }
 0x207   : > { %597 = vst [vmem:[%s596_s25] sm:$0xff] %v590_v17  ;;  %615 = vst [vmem:[%s1464_s23] sm:$0xff] %v590_v17  ;;  %v608_v20 = vmul.f32 %v590_v17, %v590_v17 }
 0x208   : > { %598 = vst [vmem:[%s596_s25 + $0x8] sm:$0xff] %v592_v19  ;;  %616 = vst [vmem:[%s1464_s23 + $0x8] sm:$0xff] %v592_v19  ;;  %v600_v21 = vadd.f32 %v592_v19, %v590_v17  ;;  %v609_v22 = vmul.f32 %v592_v19, %v592_v19 }
 0x20a   : > { %601 = vadd.xlane.f32.xlu0 %v600_v21  ;;  %v610_v23 = vadd.f32 %v609_v22, %v608_v20 }
 0x20c   : > { %611 = vadd.xlane.f32.xlu1 %v610_v23 }
 0x296   : > { %620 = sbr.rel (%p1080_p8) target bundleno = 702 (0x2be), region = 68 }
 0x297   : > { %v602_v25 = vpop.xlane.xlu0 %601 }
 0x298   : > { %v603_v27 = vadd.f32 %v602_v25, %v599_v24 }
 0x299   : > { %v612_v28 = vpop.xlane.xlu1 %611 }
 0x29a   : > { %605 = vst.msk [vmem:[#allocation4] sm:$0xff] %vm604_vm6, %v603_v27  ;;  %v613_v29 = vadd.f32 %v612_v28, %v607_v26 }
 0x29c   : > { %614 = vst.msk [vmem:[#allocation4 + $0x8] sm:$0xff] %vm604_vm6, %v613_v29 }
 0x2a1   : > { %v621_v30 = vld [vmem:[#allocation4] sm:$0xff] }
 0x2a2   : > { %v622_v32 = vmul.f32 0.001953125, %v621_v30 }
 0x2a3   : > { %v623_v31 = vld [vmem:[#allocation4 + $0x8] sm:$0xff] }
 0x2a4   : > { %v624_v33 = vmul.f32 0.001953125, %v623_v31  ;;  %v625_v34 = vmul.f32 %v622_v32, %v622_v32 }
 0x2a6   : > { %v626_v35 = vsub.f32 %v624_v33, %v625_v34 }
 0x2a8   : > { %v627_v36 = vmax.f32 %v626_v35, 0.0 }
 0x2aa   : > { %v629_v37 = vadd.f32 1e-05, %v627_v36 }
 0x2ac   : > { %1263 = vrsqrt.f32 %v629_v37 }
 0x2b6   : > { %v1264_v39 = vpop.eup %1263 }
 0x2b7   : > { %v631_v40 = vmul.f32 %v1264_v39, %v628_v38 }
 0x2b9   : > { %632 = vst.msk [vmem:[#allocation4] sm:$0xff] %vm604_vm6, %v631_v40  ;;  %v634_v42 = vmul.f32 %v631_v40, %v622_v32 }
 0x2bb   : > { %v635_v43 = vsub.f32 %v633_v41, %v634_v42 }
 0x2bd   : > { %636 = vst.msk [vmem:[#allocation4 + $0x8] sm:$0xff] %vm604_vm6, %v635_v43 }
 0x2be PF: > { %p1081_p9 = scmp.ne.s32.totalorder %s1331_s10, 1 }
 0x2bf   : > { %p1082_p10 = scmp.ne.s32.totalorder (!%p1081_p9), %s1327_s30, 0 }
 0x2c0   : > { %640 = sbr.rel (%p1081_p9) target bundleno = 1524 (0x5f4), region = 72 }
 0x2c7   : > { %644 = sbr.rel (%p1082_p10) target bundleno = 718 (0x2ce), region = 76  ;;  %vm645_vm7 = vcmask (!%p1082_p10), 7168   ;;  %v1358_v44 = vmov (!%p1082_p10), 0.0  }
 0x2c8   : > { %646 = vst.msk [vmem:[#allocation5] sm:$0xff] (!%p1082_p10), %vm645_vm7, %v1358_v44  ;;  %647 = vst.msk [vmem:[#allocation5 + $0x8] sm:$0xff] (!%p1082_p10), %vm645_vm7, %v1358_v44 }
 0x2ce PF: > { %v653_v45 = vld [vmem:[#allocation4] sm:$0xff]  ;;  %v1359_v46 = vmov 0   ;;  %v662_v47 = vld [vmem:[#allocation4 + $0x8] sm:$0xff]  ;;  %s1108_s16 = sshll.u32 %s1327_s30, 4  ;;  %s1360_s18 = smov 17   ;;  %vm678_vm8 = vcmask 138240   ;;  %v685_v2 = vlaneseq }
 0x2cf   : > { %1265 = vset.pattern.permute.xlu0 %v1359_v46  ;;  %1301 = vset.pattern.permute.xlu1 %v1359_v46  ;;  %s650_s17 = scalar_lea.vmem [#allocation2], %s1108_s16  ;;  %s1361_s19 = smov 127   ;;  %v1368_v0 = vmov 0.0   ;;  %v827_v1 = vld [vmem:[%s1664_s6] sm:$0xff]  ;;  %vm799_vm10 = vcmask 1039360   ;;  %vm747_vm12 = vcmask 916480  }
 0x2d0   : > { %656 = vperm.xlu0 %1265, %v653_v45   ;;  %v651_v49 = vld [vmem:[%s650_s17] sm:$0xff]  ;;  %v652_v50 = vld [vmem:[%s650_s17 + $0x8] sm:$0xff]  ;;  %s1362_s20 = smov 112   ;;  %s1363_s21 = smov 126   ;;  %901 = vmatprep.mubr.f32.mxu0 %v1368_v0  ;;  %v686_v3 = vand.u32 127, %v685_v2  ;;  %vm1370_vm13 = vmmov 1  }
 0x2d1   : > { %s1364_s22 = smov 111   ;;  %s1365_s24 = smov 110   ;;  %vm734_vm1 = vcmask 1031168   ;;  %vm810_vm5 = vcmask 908288   ;;  %vm760_vm6 = vcmask 900096  }
 0x2d2   : > { %s1366_s25 = smov 95   ;;  %s1367_s26 = smov 96   ;;  %v687_v4 = vadd.s32 128, %v686_v3  ;;  %v692_v7 = vand.u32 15, %v686_v3  ;;  %v826_v3 = vld [vmem:[%s1663_s5] sm:$0xff] }
 0x2d3   : > { %s1369_s27 = smov 94   ;;  %p1099_p11 = scmp.ne.s32.totalorder %s1327_s30, 1 }
 0x2d4   : > { %665 = vperm.xlu0 %1265, %v662_v47   ;;  %v699_v6 = vand.u32 15, %v687_v4  ;;  %vm1566_vm11 = vcmp.ge.s32.totalorder %v692_v7, 1  ;;  %vm1591_vm2 = vcmp.lt.s32.totalorder %v692_v7, 15 }
 0x2d5   : > { %vm1585_vm0 = vmpackc.low %vm1370_vm13, %vm1566_vm11 }
 0x2d6   : > { %vm1562_vm9 = vcmp.ge.s32.totalorder %v699_v6, 1  ;;  %vm1577_vm15 = vcmp.lt.s32.totalorder %v699_v6, 15  ;;  %vm1145_vm4 = vmpackc.low %vm1566_vm11, %vm1591_vm2  ;;  %vm786_vm11 = vcmask 769024  }
 0x2d7   : > { %vm1573_vm14 = vmpackc.low %vm1370_vm13, %vm1562_vm9 }
 0x2d8   : > { %vm1142_vm3 = vmpackc.low %vm1562_vm9, %vm1577_vm15  ;;  %vm821_vm9 = vcmask 777216  }
 0x2d9   : > { %vm1148_vm7 = vmpackc.low %vm1577_vm15, %vm1370_vm13 }
 0x34f   : > { %v657_v48 = vpop.permute.xlu0 %656 }
 0x350   : > { %v659_v51 = vmul.f32 %v657_v48, %v651_v49  ;;  %v660_v53 = vmul.f32 %v657_v48, %v652_v50 }
 0x353   : > { %v666_v52 = vpop.permute.xlu0 %665 }
 0x354   : > { %v668_v54 = vadd.f32 %v666_v52, %v659_v51  ;;  %v669_v55 = vadd.f32 %v666_v52, %v660_v53 }
 0x356   : > { %v670_v56 = vmax.f32 %v668_v54, 0.0  ;;  %v671_v57 = vmax.f32 %v669_v55, 0.0 }
 0x358   : > { %674 = vrot.lane.b32.xlu1 %v670_v56, %s1360_s18 }
 0x35c   : > { %676 = vrot.lane.b32.xlu1 %v671_v57, %s1360_s18 }
 0x3ca   : > { %v675_v58 = vpop.permute.xlu1 %674 }
 0x3cb   : > { %v1549_v59 = vsel %vm678_vm8, 0.0, %v675_v58 }
 0x3cc   : > { %793 = vrot.lane.b32.xlu1 %v1549_v59, %s1361_s19 }
 0x3ce   : > { %v677_v60 = vpop.permute.xlu1 %676 }
 0x3cf   : > { %v679_v61 = vsel %vm678_vm8, %v675_v58, %v677_v60  ;;  %v684_v62 = vsel %vm678_vm8, %v677_v60, 0.0  ;;  %vm1151_vm8 = vmpackc.low %vm1591_vm2, %vm1370_vm13  ;;  %vm917_vm13 = vcmask 7168  }
 0x3d0   : > { %v1276_v63 = vpack.i.bf16 %v684_v62, %v679_v61 }
 0x3d2   : > { %1277 = vrot.lane.b32.xlu1 %v1276_v63, %s1362_s20  ;;  %1267 = vrot.lane.b32.xlu0 %v1276_v63, %s1361_s19  ;;  %s909_s19 = scalar_lea.vmem [#allocation3], %s1108_s16 }
 0x3d6   : > { %741 = vrot.lane.b32.xlu1 %v1549_v59, %s1362_s20  ;;  %1272 = vrot.lane.b32.xlu0 %v1276_v63, %s1363_s21 }
 0x3da   : > { %1287 = vrot.lane.b32.xlu1 %v1276_v63, %s1364_s22  ;;  %728 = vrot.lane.b32.xlu0 %v1549_v59, %s1363_s21 }
 0x3de   : > { %804 = vrot.lane.b32.xlu1 %v1549_v59, %s1364_s22  ;;  %1282 = vrot.lane.b32.xlu0 %v1276_v63, %s1365_s24 }
 0x3e2   : > { %1297 = vrot.lane.b32.xlu1 %v1276_v63, %s1366_s25  ;;  %754 = vrot.lane.b32.xlu0 %v1549_v59, %s1365_s24 }
 0x3e6   : > { %815 = vrot.lane.b32.xlu1 %v1549_v59, %s1366_s25  ;;  %1292 = vrot.lane.b32.xlu0 %v1276_v63, %s1367_s26 }
 0x3ea   : > { %784 = vrot.lane.b32.xlu1 %v684_v62, %s1369_s27  ;;  %767 = vrot.lane.b32.xlu0 %v1549_v59, %s1367_s26 }
 0x3ee   : > { %782 = vrot.lane.b32.xlu0 %v679_v61, %s1369_s27  ;;  %830 = vperm.xlu1 %1301, %v827_v1  }
 0x3f2   : > { %780 = vrot.lane.b32.xlu0 %v1549_v59, %s1369_s27 }
 0x43e   : > { %v794_v5 = vpop.permute.xlu1 %793 }
 0x444   : > { %v1268_v8 = vpop.permute.xlu0 %1267  ;;  %v1278_v9 = vpop.permute.xlu1 %1277 }
 0x445   : > { %v1270_v11 = vunpack.i.h.bf16 %v1268_v8  ;;  %v1269_v12 = vunpack.i.l.bf16 %v1268_v8  ;;  %v1280_v14 = vunpack.i.h.bf16 %v1278_v9  ;;  %v1279_v15 = vunpack.i.l.bf16 %v1278_v9 }
 0x447   : > { %v801_v16 = vsel %vm799_vm10, %v1269_v12, %v1270_v11  ;;  %v800_v18 = vsel %vm799_vm10, %v794_v5, %v1269_v12  ;;  %v749_v28 = vsel %vm747_vm12, %v1279_v15, %v1280_v14  ;;  %vm773_vm10 = vcmask 785408   ;;  %v912_v14 = vld [vmem:[#allocation5] sm:$0xff] }
 0x448   : > { %v1273_v19 = vpop.permute.xlu0 %1272  ;;  %v742_v20 = vpop.permute.xlu1 %741  ;;  %v1135_v22 = vpack.c.bf16 %v801_v16, %v679_v61  ;;  %v1138_v23 = vpack.c.bf16 %v800_v18, %v1549_v59  ;;  %v920_v16 = vld [vmem:[#allocation5 + $0x8] sm:$0xff] }
 0x449   : > { %v1275_v25 = vunpack.i.h.bf16 %v1273_v19  ;;  %v1274_v26 = vunpack.i.l.bf16 %v1273_v19  ;;  %v748_v33 = vsel %vm747_vm12, %v742_v20, %v1279_v15  ;;  %vm833_vm12 = vcmask 588800  }
 0x44a   : > { %1137 = vmatprep.subr.msk.bf16.mxu0 %vm1573_vm14, %v1135_v22 }
 0x44b   : > { %1140 = vmatpush1.bf16.msk.msra.mxu0 %vm1585_vm0, %v1138_v23  ;;  %v736_v29 = vsel %vm734_vm1, %v1274_v26, %v1275_v25 }
 0x44c   : > { %v729_v30 = vpop.permute.xlu0 %728  ;;  %v1141_v31 = vpack.c.bf16 %v749_v28, %v736_v29  ;;  %v1288_v32 = vpop.permute.xlu1 %1287  ;;  %v941_v28 = vld [vmem:[%s1665_s7] sm:$0xff] (!%p1099_p11) }
 0x44d   : > { %v735_v34 = vsel %vm734_vm1, %v729_v30, %v1274_v26  ;;  %v1290_v36 = vunpack.i.h.bf16 %v1288_v32  ;;  %v1289_v37 = vunpack.i.l.bf16 %v1288_v32 }
 0x44e   : > { %v1144_v35 = vpack.c.bf16 %v748_v33, %v735_v34  ;;  %1143 = vmatprep.subr.msk.bf16.mxu0 %vm1142_vm3, %v1141_v31  ;;  %v946_v31 = vld [vmem:[%s1666_s8] sm:$0xff] (!%p1099_p11) }
 0x44f   : > { %v812_v42 = vsel %vm810_vm5, %v1289_v37, %v1290_v36 }
 0x450   : > { %v1283_v38 = vpop.permute.xlu0 %1282  ;;  %v805_v39 = vpop.permute.xlu1 %804  ;;  %1146 = vmatpush1.bf16.msk.msra.mxu0 %vm1145_vm4, %v1144_v35 }
 0x451   : > { %v1285_v40 = vunpack.i.h.bf16 %v1283_v38  ;;  %v1284_v41 = vunpack.i.l.bf16 %v1283_v38  ;;  %v811_v47 = vsel %vm810_vm5, %v805_v39, %v1289_v37 }
 0x453   : > { %v762_v43 = vsel %vm760_vm6, %v1284_v41, %v1285_v40 }
 0x454   : > { %v755_v44 = vpop.permute.xlu0 %754  ;;  %v1147_v45 = vpack.c.bf16 %v762_v43, %v812_v42  ;;  %v1298_v46 = vpop.permute.xlu1 %1297 }
 0x455   : > { %v761_v48 = vsel %vm760_vm6, %v755_v44, %v1284_v41  ;;  %v1300_v50 = vunpack.i.h.bf16 %v1298_v46  ;;  %v1299_v51 = vunpack.i.l.bf16 %v1298_v46 }
 0x456   : > { %v1150_v49 = vpack.c.bf16 %v761_v48, %v811_v47  ;;  %1149 = vmatprep.subr.msk.bf16.mxu0 %vm1148_vm7, %v1147_v45 }
 0x457   : > { %v823_v56 = vsel %vm821_vm9, %v1299_v51, %v1300_v50 }
 0x458   : > { %v1293_v52 = vpop.permute.xlu0 %1292  ;;  %1152 = vmatpush1.bf16.msk.msra.mxu0 %vm1151_vm8, %v1150_v49  ;;  %v816_v55 = vpop.permute.xlu1 %815 }
 0x459   : > { %v1295_v53 = vunpack.i.h.bf16 %v1293_v52  ;;  %v1294_v54 = vunpack.i.l.bf16 %v1293_v52  ;;  %v822_v60 = vsel %vm821_vm9, %v816_v55, %v1299_v51 }
 0x45b   : > { %v775_v57 = vsel %vm773_vm10, %v1294_v54, %v1295_v53 }
 0x45c   : > { %v768_v58 = vpop.permute.xlu0 %767  ;;  %v1153_v59 = vpack.c.bf16 %v823_v56, %v775_v57  ;;  %v785_v63 = vpop.permute.xlu1 %784 }
 0x45d   : > { %v774_v61 = vsel %vm773_vm10, %v768_v58, %v1294_v54 }
 0x45e   : > { %v1156_v62 = vpack.c.bf16 %v822_v60, %v774_v61  ;;  %1155 = vmatprep.subr.msk.bf16.mxu0 %vm1573_vm14, %v1153_v59 }
 0x460   : > { %v783_v0 = vpop.permute.xlu0 %782  ;;  %1158 = vmatpush1.bf16.msk.msra.mxu0 %vm1585_vm0, %v1156_v62 }
 0x461   : > { %v788_v1 = vsel %vm786_vm11, %v783_v0, %v785_v63 }
 0x462   : > { %1095 = vmatprep.subr.msk.mxu0 %vm1577_vm15, %v788_v1 }
 0x464   : > { %v781_v2 = vpop.permute.xlu0 %780 }
 0x465   : > { %v787_v4 = vsel %vm786_vm11, %v781_v2, %v783_v0 }
 0x466   : > { %1096 = vmatpush1.msk.msra.mxu0 %vm1591_vm2, %v787_v4 }
 0x467   : > { %1097 = vmatmul.mubr.msk.f32.vlgmr.msra.gmra.mrb[0].mxu0 %vm833_vm12, %v826_v3 }
 0x46d   : > { %v831_v5 = vpop.permute.xlu1 %830 }
 0x53a   : > { %v903_v6 = vpop.f32.mrb[0].mxu0 }
 0x53b   : > { %v904_v7 = vadd.f32 %v903_v6, %v831_v5  ;;  %v905_v8 = vpop.f32.mrb[1].mxu0 }
 0x53c   : > { %v906_v9 = vadd.f32 %v905_v8, %v831_v5 }
 0x53d   : > { %910 = vst [vmem:[%s909_s19] sm:$0xff] %v904_v7  ;;  %928 = vst [vmem:[%s1464_s23] sm:$0xff] %v904_v7  ;;  %v921_v10 = vmul.f32 %v904_v7, %v904_v7 }
 0x53e   : > { %911 = vst [vmem:[%s909_s19 + $0x8] sm:$0xff] %v906_v9  ;;  %929 = vst [vmem:[%s1464_s23 + $0x8] sm:$0xff] %v906_v9  ;;  %v913_v11 = vadd.f32 %v906_v9, %v904_v7  ;;  %v922_v12 = vmul.f32 %v906_v9, %v906_v9 }
 0x540   : > { %914 = vadd.xlane.f32.xlu0 %v913_v11  ;;  %v923_v13 = vadd.f32 %v922_v12, %v921_v10 }
 0x542   : > { %924 = vadd.xlane.f32.xlu1 %v923_v13 }
 0x5cc   : > { %933 = sbr.rel (%p1099_p11) target bundleno = 1524 (0x5f4), region = 80 }
 0x5cd   : > { %v915_v15 = vpop.xlane.xlu0 %914 }
 0x5ce   : > { %v916_v17 = vadd.f32 %v915_v15, %v912_v14 }
 0x5cf   : > { %v925_v18 = vpop.xlane.xlu1 %924 }
 0x5d0   : > { %918 = vst.msk [vmem:[#allocation5] sm:$0xff] %vm917_vm13, %v916_v17  ;;  %v926_v19 = vadd.f32 %v925_v18, %v920_v16 }
 0x5d2   : > { %927 = vst.msk [vmem:[#allocation5 + $0x8] sm:$0xff] %vm917_vm13, %v926_v19 }
 0x5d7   : > { %v934_v20 = vld [vmem:[#allocation5] sm:$0xff] }
 0x5d8   : > { %v935_v22 = vmul.f32 0.001953125, %v934_v20 }
 0x5d9   : > { %v936_v21 = vld [vmem:[#allocation5 + $0x8] sm:$0xff] }
 0x5da   : > { %v937_v23 = vmul.f32 0.001953125, %v936_v21  ;;  %v938_v24 = vmul.f32 %v935_v22, %v935_v22 }
 0x5dc   : > { %v939_v25 = vsub.f32 %v937_v23, %v938_v24 }
 0x5de   : > { %v940_v26 = vmax.f32 %v939_v25, 0.0 }
 0x5e0   : > { %v942_v27 = vadd.f32 1e-05, %v940_v26 }
 0x5e2   : > { %1302 = vrsqrt.f32 %v942_v27 }
 0x5ec   : > { %v1303_v29 = vpop.eup %1302 }
 0x5ed   : > { %v944_v30 = vmul.f32 %v1303_v29, %v941_v28 }
 0x5ef   : > { %945 = vst.msk [vmem:[#allocation5] sm:$0xff] %vm917_vm13, %v944_v30  ;;  %v947_v32 = vmul.f32 %v944_v30, %v935_v22 }
 0x5f1   : > { %v948_v33 = vsub.f32 %v946_v31, %v947_v32 }
 0x5f3   : > { %949 = vst.msk [vmem:[#allocation5 + $0x8] sm:$0xff] %vm917_vm13, %v948_v33 }
 0x5f4 PF: > { %p1100_p12 = scmp.ne.s32.totalorder %s1331_s10, 2 }
 0x5f5   : > { %v1371_v35 = vmov (!%p1100_p12), 0   ;;  %s1110_s24 = sshll.u32 (!%p1100_p12), %s1327_s30, 4 }
 0x5f6   : > { %953 = sbr.rel (%p1100_p12) target bundleno = 1666 (0x682), region = 84  ;;  %1304 = vset.pattern.permute.xlu0 (!%p1100_p12), %v1371_v35  ;;  %s956_s25 = scalar_lea.vmem (!%p1100_p12), [#allocation3], %s1110_s24 }
 0x5f7   : > { %v957_v38 = vld [vmem:[%s956_s25] sm:$0xff] (!%p1100_p12)  ;;  %v958_v39 = vld [vmem:[%s956_s25 + $0x8] sm:$0xff] (!%p1100_p12) }
 0x5f8   : > { %v959_v34 = vld [vmem:[#allocation5] sm:$0xff] (!%p1100_p12) }
 0x5f9   : > { %962 = vperm.xlu0 (!%p1100_p12), %1304, %v959_v34  }
 0x5fa   : > { %v968_v36 = vld [vmem:[#allocation5 + $0x8] sm:$0xff] (!%p1100_p12) }
 0x5fd   : > { %971 = vperm.xlu0 %1304, %v968_v36  }
 0x678   : > { %v963_v37 = vpop.permute.xlu0 %962 }
 0x679   : > { %v965_v40 = vmul.f32 %v963_v37, %v957_v38  ;;  %v966_v41 = vmul.f32 %v963_v37, %v958_v39 }
 0x67c   : > { %v972_v42 = vpop.permute.xlu0 %971 }
 0x67d   : > { %v974_v43 = vadd.f32 %v972_v42, %v965_v40  ;;  %v975_v44 = vadd.f32 %v972_v42, %v966_v41 }
 0x67f   : > { %v976_v45 = vmax.f32 %v974_v43, 0.0  ;;  %v977_v46 = vmax.f32 %v975_v44, 0.0 }
 0x681   : > { %978 = vst [vmem:[%s1464_s23] sm:$0xff] %v976_v45  ;;  %979 = vst [vmem:[%s1464_s23 + $0x8] sm:$0xff] %v977_v46 }
 0x682 PF: > { %s19_s13 = sadd.s32 1, %s1343_s13   ;;  %s1692_s30 = smov %s1335_s11 }
 0x683   : > { %p16_p13 = scmp.ge.s32.totalorder %s19_s13, 8   ;;  %s1693_s10 = smov %s1339_s12 }
 0x684   : > { %s1694_s11 = smov %s1697_s14  ;;  %s1695_s12 = smov %s1701_s15 }
 0x685   :  { %18 = sbr.rel (!%p16_p13) target bundleno = 3 (0x3), region = 122 }

</bundles_post_ra>
